<compile_context>
chip_gen: v7x
topology: tpu7x:2x2x1
jax: 0.10.0
libtpu: 0.0.40
codegen_flags: <defaults>
</compile_context>

<pallas_src>
import jax
import jax.numpy as jnp
from jax.experimental import pallas as pl

# ----------------------------- tiny BERT config -----------------------------
VOCAB = 128
MAX_POS = 16
HIDDEN = 32
N_HEADS = 4
HEAD_DIM = HIDDEN // N_HEADS
FFN = 64
N_LAYERS = 2
LN_EPS = 1e-12


# ------------------------------- math helpers -------------------------------
def _layernorm(x, gamma, beta):
    mean = jnp.mean(x, axis=-1, keepdims=True)
    var = jnp.mean((x - mean) ** 2, axis=-1, keepdims=True)
    return (x - mean) * jax.lax.rsqrt(var + LN_EPS) * gamma + beta


def _gelu(x):
    # tanh approximation of GELU (BERT-style activation).
    # TODO(synk): HF BERT default is exact erf-GELU; tanh approx differs slightly.
    return 0.5 * x * (1.0 + jnp.tanh(0.7978845608028654 * (x + 0.044715 * x * x * x)))


# ----------------------------- fused Pallas kernel ---------------------------
def encoder_kernel(x_ref, bias_ref,
                   emb_g_ref, emb_b_ref,
                   wqkv_ref, bqkv_ref, wo_ref, bo_ref,
                   ln1g_ref, ln1b_ref,
                   w1_ref, b1_ref, w2_ref, b2_ref,
                   ln2g_ref, ln2b_ref,
                   wp_ref, bp_ref,
                   out_ref, pooled_ref):
    """Entire encoder forward for the whole batch in one invocation.

    x_ref:    (B*S, H)   raw embeddings (word+pos+type), pre-LayerNorm
    bias_ref: (B*S, B*S) block-diagonal additive attention bias (0 / -1e9)
    stacked per-layer weights have a leading N_LAYERS axis.
    out_ref:  (B*S, H)   last hidden state
    pooled_ref: (B, H)   tanh(CLS @ Wp + bp)
    """
    B = pooled_ref.shape[0]
    N = x_ref.shape[0]
    S = N // B

    # Embedding LayerNorm fused into the same kernel.
    x = _layernorm(x_ref[...], emb_g_ref[...], emb_b_ref[...])      # (N, H)
    bias = bias_ref[...]                                            # (N, N)
    scale = 1.0 / (HEAD_DIM ** 0.5)

    # Short fixed layer count -> static unroll (full scheduler visibility).
    for l in range(N_LAYERS):
        # ---- self attention ----
        wqkv = wqkv_ref[l]                                          # (H, 3H)
        qkv = jnp.dot(x, wqkv, preferred_element_type=jnp.float32) + bqkv_ref[l]
        q = qkv[:, 0:HIDDEN]
        k = qkv[:, HIDDEN:2 * HIDDEN]
        v = qkv[:, 2 * HIDDEN:3 * HIDDEN]
        wo = wo_ref[l]                                              # (H, H)

        attn = None
        for h in range(N_HEADS):
            sl = slice(h * HEAD_DIM, (h + 1) * HEAD_DIM)
            # scores: contract last dims directly (no explicit k.T)
            s = jax.lax.dot_general(
                q[:, sl], k[:, sl],
                (((1,), (1,)), ((), ())),
                preferred_element_type=jnp.float32) * scale + bias  # (N, N)
            s = s - jnp.max(s, axis=-1, keepdims=True)
            p = jnp.exp(s)
            p = p * pl.reciprocal(jnp.sum(p, axis=-1, keepdims=True), approx=True)
            ctx = jnp.dot(p, v[:, sl], preferred_element_type=jnp.float32)   # (N, Hd)
            # fold head output straight through its W_o slice -> no concat
            contrib = jnp.dot(ctx, wo[sl, :], preferred_element_type=jnp.float32)
            attn = contrib if attn is None else attn + contrib
        attn = attn + bo_ref[l]

        x = _layernorm(x + attn, ln1g_ref[l], ln1b_ref[l])

        # ---- feed-forward ----
        h1 = _gelu(jnp.dot(x, w1_ref[l], preferred_element_type=jnp.float32) + b1_ref[l])
        h2 = jnp.dot(h1, w2_ref[l], preferred_element_type=jnp.float32) + b2_ref[l]
        x = _layernorm(x + h2, ln2g_ref[l], ln2b_ref[l])

    out_ref[...] = x

    # ---- pooler: tanh(CLS @ Wp + bp) ----
    cls = jnp.concatenate([x[b * S:b * S + 1, :] for b in range(B)], axis=0)  # (B, H)
    pooled_ref[...] = jnp.tanh(
        jnp.dot(cls, wp_ref[...], preferred_element_type=jnp.float32) + bp_ref[...])


# ----------------------------- parameter building ----------------------------
def init_params(key):
    # TODO(synk): AutoModel.from_pretrained / checkpoint "module."-prefix remap is
    # host-side weight loading with no Pallas equivalent; random init is used here.
    def dense(k, shape):
        return jax.random.normal(k, shape, jnp.float32) * 0.02

    k = jax.random.split(key, 8)
    return {
        "word_emb": dense(k[0], (VOCAB, HIDDEN)),
        "pos_emb": dense(k[1], (MAX_POS, HIDDEN)),
        "type_emb": dense(k[2], (2, HIDDEN)),
        "emb_ln_g": jnp.ones((1, HIDDEN), jnp.float32),
        "emb_ln_b": jnp.zeros((1, HIDDEN), jnp.float32),
        "pooler_w": dense(k[3], (HIDDEN, HIDDEN)),
        "pooler_b": jnp.zeros((1, HIDDEN), jnp.float32),
        # stacked per-layer weights (leading layer axis)
        "wqkv": dense(k[4], (N_LAYERS, HIDDEN, 3 * HIDDEN)),
        "bqkv": jnp.zeros((N_LAYERS, 1, 3 * HIDDEN), jnp.float32),
        "wo": dense(k[5], (N_LAYERS, HIDDEN, HIDDEN)),
        "bo": jnp.zeros((N_LAYERS, 1, HIDDEN), jnp.float32),
        "ln1g": jnp.ones((N_LAYERS, 1, HIDDEN), jnp.float32),
        "ln1b": jnp.zeros((N_LAYERS, 1, HIDDEN), jnp.float32),
        "w1": dense(k[6], (N_LAYERS, HIDDEN, FFN)),
        "b1": jnp.zeros((N_LAYERS, 1, FFN), jnp.float32),
        "w2": dense(k[7], (N_LAYERS, FFN, HIDDEN)),
        "b2": jnp.zeros((N_LAYERS, 1, HIDDEN), jnp.float32),
        "ln2g": jnp.ones((N_LAYERS, 1, HIDDEN), jnp.float32),
        "ln2b": jnp.zeros((N_LAYERS, 1, HIDDEN), jnp.float32),
    }


# --------------------------------- forward ----------------------------------
def encoder_forward(params, input_ids, attn_mask):
    """Mirrors `self.encoder(input_ids=x, attention_mask=attn_mask)` of a
    BERT-style AutoModel: returns (last_hidden_state, pooler_output)."""
    B, S = input_ids.shape
    N = B * S

    # Embedding gathers (plain-JAX glue): word + position + token-type-0.
    word = jnp.take(params["word_emb"], input_ids, axis=0)          # (B, S, H)
    pos = params["pos_emb"][:S][None, :, :]                         # (1, S, H)
    typ = params["type_emb"][0][None, None, :]                      # (1, 1, H)
    emb = (word + pos + typ).reshape(N, HIDDEN)                     # (B*S, H)

    # Block-diagonal additive attention bias over the folded (B*S) key axis:
    # 0 where same batch AND key unmasked, -1e9 otherwise.
    key_ok = attn_mask.astype(jnp.float32).reshape(N)               # (N,)
    batch_ids = jnp.repeat(jnp.arange(B), S)                        # (N,)
    same_batch = batch_ids[:, None] == batch_ids[None, :]           # (N, N)
    allowed = jnp.where(same_batch, key_ok[None, :], 0.0)
    bias = (1.0 - allowed) * (-1e9)                                 # (N, N) f32

    last2d, pooled = pl.pallas_call(
        encoder_kernel,
        out_shape=(jax.ShapeDtypeStruct((N, HIDDEN), jnp.float32),
                   jax.ShapeDtypeStruct((B, HIDDEN), jnp.float32)),
        # grid=() -> single invocation, every array whole-block VMEM-resident.
    )(emb, bias,
      params["emb_ln_g"], params["emb_ln_b"],
      params["wqkv"], params["bqkv"], params["wo"], params["bo"],
      params["ln1g"], params["ln1b"],
      params["w1"], params["b1"], params["w2"], params["b2"],
      params["ln2g"], params["ln2b"],
      params["pooler_w"], params["pooler_b"])

    return last2d.reshape(B, S, HIDDEN), pooled


if __name__ == "__main__":
    key = jax.random.PRNGKey(0)
    pkey, ikey = jax.random.split(key)
    params = init_params(pkey)

    B, S = 2, 8
    input_ids = jax.random.randint(ikey, (B, S), 0, VOCAB, dtype=jnp.int32)
    # mask out the last two tokens of the second example
    attn_mask = jnp.array([[1] * S, [1] * (S - 2) + [0, 0]], dtype=jnp.int32)

    last_hidden, pooled = jax.jit(encoder_forward)(params, input_ids, attn_mask)
    jax.block_until_ready((last_hidden, pooled))
    assert last_hidden.shape == (B, S, HIDDEN)
    assert pooled.shape == (B, HIDDEN)
    print("KERNEL_OK")
</pallas_src>

<mosaic_0001>
module attributes {stable_mosaic.version = 11 : i64} {
  func.func @encoder_kernel(%arg0: memref<16x32xf32, #tpu.memory_space<vmem>>, %arg1: memref<16x16xf32, #tpu.memory_space<vmem>>, %arg2: memref<1x32xf32, #tpu.memory_space<vmem>>, %arg3: memref<1x32xf32, #tpu.memory_space<vmem>>, %arg4: memref<2x32x96xf32, #tpu.memory_space<vmem>>, %arg5: memref<2x1x96xf32, #tpu.memory_space<vmem>>, %arg6: memref<2x32x32xf32, #tpu.memory_space<vmem>>, %arg7: memref<2x1x32xf32, #tpu.memory_space<vmem>>, %arg8: memref<2x1x32xf32, #tpu.memory_space<vmem>>, %arg9: memref<2x1x32xf32, #tpu.memory_space<vmem>>, %arg10: memref<2x32x64xf32, #tpu.memory_space<vmem>>, %arg11: memref<2x1x64xf32, #tpu.memory_space<vmem>>, %arg12: memref<2x64x32xf32, #tpu.memory_space<vmem>>, %arg13: memref<2x1x32xf32, #tpu.memory_space<vmem>>, %arg14: memref<2x1x32xf32, #tpu.memory_space<vmem>>, %arg15: memref<2x1x32xf32, #tpu.memory_space<vmem>>, %arg16: memref<32x32xf32, #tpu.memory_space<vmem>>, %arg17: memref<1x32xf32, #tpu.memory_space<vmem>>, %arg18: memref<16x32xf32, #tpu.memory_space<vmem>>, %arg19: memref<2x32xf32, #tpu.memory_space<vmem>>) attributes {dimension_semantics = [], scalar_prefetch = 0 : i64, scratch_operands = 0 : i64, tpu.core_type = #tpu.core_type<tc>} {
    %c0 = arith.constant 0 : index
    %c0_0 = arith.constant 0 : index
    %0 = vector.load %arg0[%c0, %c0_0] : memref<16x32xf32, #tpu.memory_space<vmem>>, vector<16x32xf32>
    %c0_1 = arith.constant 0 : index
    %c0_2 = arith.constant 0 : index
    %1 = vector.load %arg2[%c0_1, %c0_2] : memref<1x32xf32, #tpu.memory_space<vmem>>, vector<1x32xf32>
    %c0_3 = arith.constant 0 : index
    %c0_4 = arith.constant 0 : index
    %2 = vector.load %arg3[%c0_3, %c0_4] : memref<1x32xf32, #tpu.memory_space<vmem>>, vector<1x32xf32>
    %cst = arith.constant dense<0.000000e+00> : vector<16xf32>
    %3 = vector.multi_reduction <add>, %0, %cst [1] : vector<16x32xf32> to vector<16xf32>
    %4 = vector.shape_cast %3 : vector<16xf32> to vector<16x1xf32>
    %cst_5 = arith.constant 3.200000e+01 : f32
    %5 = vector.broadcast %cst_5 : f32 to vector<16x1xf32>
    %6 = arith.divf %4, %5 : vector<16x1xf32>
    %7 = vector.broadcast %6 : vector<16x1xf32> to vector<16x32xf32>
    %8 = arith.subf %0, %7 : vector<16x32xf32>
    %9 = arith.mulf %8, %8 : vector<16x32xf32>
    %cst_6 = arith.constant dense<0.000000e+00> : vector<16xf32>
    %10 = vector.multi_reduction <add>, %9, %cst_6 [1] : vector<16x32xf32> to vector<16xf32>
    %11 = vector.shape_cast %10 : vector<16xf32> to vector<16x1xf32>
    %cst_7 = arith.constant 3.200000e+01 : f32
    %12 = vector.broadcast %cst_7 : f32 to vector<16x1xf32>
    %13 = arith.divf %11, %12 : vector<16x1xf32>
    %14 = vector.broadcast %6 : vector<16x1xf32> to vector<16x32xf32>
    %15 = arith.subf %0, %14 : vector<16x32xf32>
    %cst_8 = arith.constant 9.99999996E-13 : f32
    %16 = vector.broadcast %cst_8 : f32 to vector<16x1xf32>
    %17 = arith.addf %13, %16 : vector<16x1xf32>
    %18 = math.rsqrt %17 : vector<16x1xf32>
    %19 = vector.broadcast %18 : vector<16x1xf32> to vector<16x32xf32>
    %20 = arith.mulf %15, %19 : vector<16x32xf32>
    %21 = vector.broadcast %1 : vector<1x32xf32> to vector<16x32xf32>
    %22 = arith.mulf %20, %21 : vector<16x32xf32>
    %23 = vector.broadcast %2 : vector<1x32xf32> to vector<16x32xf32>
    %24 = arith.addf %22, %23 : vector<16x32xf32>
    %c0_9 = arith.constant 0 : index
    %c0_10 = arith.constant 0 : index
    %25 = vector.load %arg1[%c0_9, %c0_10] : memref<16x16xf32, #tpu.memory_space<vmem>>, vector<16x16xf32>
    %c0_11 = arith.constant 0 : index
    %c0_12 = arith.constant 0 : index
    %c0_13 = arith.constant 0 : index
    %26 = vector.load %arg4[%c0_11, %c0_12, %c0_13] : memref<2x32x96xf32, #tpu.memory_space<vmem>>, vector<1x32x96xf32>
    %27 = vector.shape_cast %26 : vector<1x32x96xf32> to vector<32x96xf32>
    %cst_14 = arith.constant dense<0.000000e+00> : vector<16x96xf32>
    %28 = tpu.matmul %24, %27, %cst_14 {dimension_numbers = #tpu.dot_dimension_numbers<[1], [0], [0], [1], [0, 0, 1, 1], [], []>} : vector<16x32xf32>, vector<32x96xf32>, vector<16x96xf32> -> vector<16x96xf32>
    %c0_15 = arith.constant 0 : index
    %c0_16 = arith.constant 0 : index
    %c0_17 = arith.constant 0 : index
    %29 = vector.load %arg5[%c0_15, %c0_16, %c0_17] : memref<2x1x96xf32, #tpu.memory_space<vmem>>, vector<1x1x96xf32>
    %30 = vector.shape_cast %29 : vector<1x1x96xf32> to vector<1x96xf32>
    %31 = vector.broadcast %30 : vector<1x96xf32> to vector<16x96xf32>
    %32 = arith.addf %28, %31 : vector<16x96xf32>
    %33 = vector.extract_strided_slice %32 {offsets = [0, 0], sizes = [16, 32], strides = [1, 1]} : vector<16x96xf32> to vector<16x32xf32>
    %34 = vector.extract_strided_slice %32 {offsets = [0, 32], sizes = [16, 32], strides = [1, 1]} : vector<16x96xf32> to vector<16x32xf32>
    %35 = vector.extract_strided_slice %32 {offsets = [0, 64], sizes = [16, 32], strides = [1, 1]} : vector<16x96xf32> to vector<16x32xf32>
    %c0_18 = arith.constant 0 : index
    %c0_19 = arith.constant 0 : index
    %c0_20 = arith.constant 0 : index
    %36 = vector.load %arg6[%c0_18, %c0_19, %c0_20] : memref<2x32x32xf32, #tpu.memory_space<vmem>>, vector<1x32x32xf32>
    %37 = vector.shape_cast %36 : vector<1x32x32xf32> to vector<32x32xf32>
    %38 = vector.extract_strided_slice %33 {offsets = [0, 0], sizes = [16, 8], strides = [1, 1]} : vector<16x32xf32> to vector<16x8xf32>
    %39 = vector.extract_strided_slice %34 {offsets = [0, 0], sizes = [16, 8], strides = [1, 1]} : vector<16x32xf32> to vector<16x8xf32>
    %cst_21 = arith.constant dense<0.000000e+00> : vector<16x16xf32>
    %40 = tpu.matmul %38, %39, %cst_21 {dimension_numbers = #tpu.dot_dimension_numbers<[1], [1], [0], [0], [0, 0, 1, 0], [], []>} : vector<16x8xf32>, vector<16x8xf32>, vector<16x16xf32> -> vector<16x16xf32>
    %cst_22 = arith.constant 0.353553385 : f32
    %41 = vector.broadcast %cst_22 : f32 to vector<16x16xf32>
    %42 = arith.mulf %40, %41 : vector<16x16xf32>
    %43 = arith.addf %42, %25 : vector<16x16xf32>
    %cst_23 = arith.constant dense<0xFF800000> : vector<16xf32>
    %44 = vector.multi_reduction <maximumf>, %43, %cst_23 [1] : vector<16x16xf32> to vector<16xf32>
    %45 = vector.shape_cast %44 : vector<16xf32> to vector<16x1xf32>
    %46 = vector.broadcast %45 : vector<16x1xf32> to vector<16x16xf32>
    %47 = arith.subf %43, %46 : vector<16x16xf32>
    %48 = math.exp %47 : vector<16x16xf32>
    %cst_24 = arith.constant dense<0.000000e+00> : vector<16xf32>
    %49 = vector.multi_reduction <add>, %48, %cst_24 [1] : vector<16x16xf32> to vector<16xf32>
    %50 = vector.shape_cast %49 : vector<16xf32> to vector<16x1xf32>
    %51 = tpu.reciprocal %50 {approx = true} : vector<16x1xf32> -> vector<16x1xf32>
    %52 = vector.broadcast %51 : vector<16x1xf32> to vector<16x16xf32>
    %53 = arith.mulf %48, %52 : vector<16x16xf32>
    %54 = vector.extract_strided_slice %35 {offsets = [0, 0], sizes = [16, 8], strides = [1, 1]} : vector<16x32xf32> to vector<16x8xf32>
    %cst_25 = arith.constant dense<0.000000e+00> : vector<16x8xf32>
    %55 = tpu.matmul %53, %54, %cst_25 {dimension_numbers = #tpu.dot_dimension_numbers<[1], [0], [0], [1], [0, 0, 1, 1], [], []>} : vector<16x16xf32>, vector<16x8xf32>, vector<16x8xf32> -> vector<16x8xf32>
    %56 = vector.extract_strided_slice %37 {offsets = [0, 0], sizes = [8, 32], strides = [1, 1]} : vector<32x32xf32> to vector<8x32xf32>
    %cst_26 = arith.constant dense<0.000000e+00> : vector<16x32xf32>
    %57 = tpu.matmul %55, %56, %cst_26 {dimension_numbers = #tpu.dot_dimension_numbers<[1], [0], [0], [1], [0, 0, 1, 1], [], []>} : vector<16x8xf32>, vector<8x32xf32>, vector<16x32xf32> -> vector<16x32xf32>
    %58 = vector.extract_strided_slice %33 {offsets = [0, 8], sizes = [16, 8], strides = [1, 1]} : vector<16x32xf32> to vector<16x8xf32>
    %59 = vector.extract_strided_slice %34 {offsets = [0, 8], sizes = [16, 8], strides = [1, 1]} : vector<16x32xf32> to vector<16x8xf32>
    %cst_27 = arith.constant dense<0.000000e+00> : vector<16x16xf32>
    %60 = tpu.matmul %58, %59, %cst_27 {dimension_numbers = #tpu.dot_dimension_numbers<[1], [1], [0], [0], [0, 0, 1, 0], [], []>} : vector<16x8xf32>, vector<16x8xf32>, vector<16x16xf32> -> vector<16x16xf32>
    %cst_28 = arith.constant 0.353553385 : f32
    %61 = vector.broadcast %cst_28 : f32 to vector<16x16xf32>
    %62 = arith.mulf %60, %61 : vector<16x16xf32>
    %63 = arith.addf %62, %25 : vector<16x16xf32>
    %cst_29 = arith.constant dense<0xFF800000> : vector<16xf32>
    %64 = vector.multi_reduction <maximumf>, %63, %cst_29 [1] : vector<16x16xf32> to vector<16xf32>
    %65 = vector.shape_cast %64 : vector<16xf32> to vector<16x1xf32>
    %66 = vector.broadcast %65 : vector<16x1xf32> to vector<16x16xf32>
    %67 = arith.subf %63, %66 : vector<16x16xf32>
    %68 = math.exp %67 : vector<16x16xf32>
    %cst_30 = arith.constant dense<0.000000e+00> : vector<16xf32>
    %69 = vector.multi_reduction <add>, %68, %cst_30 [1] : vector<16x16xf32> to vector<16xf32>
    %70 = vector.shape_cast %69 : vector<16xf32> to vector<16x1xf32>
    %71 = tpu.reciprocal %70 {approx = true} : vector<16x1xf32> -> vector<16x1xf32>
    %72 = vector.broadcast %71 : vector<16x1xf32> to vector<16x16xf32>
    %73 = arith.mulf %68, %72 : vector<16x16xf32>
    %74 = vector.extract_strided_slice %35 {offsets = [0, 8], sizes = [16, 8], strides = [1, 1]} : vector<16x32xf32> to vector<16x8xf32>
    %cst_31 = arith.constant dense<0.000000e+00> : vector<16x8xf32>
    %75 = tpu.matmul %73, %74, %cst_31 {dimension_numbers = #tpu.dot_dimension_numbers<[1], [0], [0], [1], [0, 0, 1, 1], [], []>} : vector<16x16xf32>, vector<16x8xf32>, vector<16x8xf32> -> vector<16x8xf32>
    %76 = vector.extract_strided_slice %37 {offsets = [8, 0], sizes = [8, 32], strides = [1, 1]} : vector<32x32xf32> to vector<8x32xf32>
    %cst_32 = arith.constant dense<0.000000e+00> : vector<16x32xf32>
    %77 = tpu.matmul %75, %76, %cst_32 {dimension_numbers = #tpu.dot_dimension_numbers<[1], [0], [0], [1], [0, 0, 1, 1], [], []>} : vector<16x8xf32>, vector<8x32xf32>, vector<16x32xf32> -> vector<16x32xf32>
    %78 = arith.addf %57, %77 : vector<16x32xf32>
    %79 = vector.extract_strided_slice %33 {offsets = [0, 16], sizes = [16, 8], strides = [1, 1]} : vector<16x32xf32> to vector<16x8xf32>
    %80 = vector.extract_strided_slice %34 {offsets = [0, 16], sizes = [16, 8], strides = [1, 1]} : vector<16x32xf32> to vector<16x8xf32>
    %cst_33 = arith.constant dense<0.000000e+00> : vector<16x16xf32>
    %81 = tpu.matmul %79, %80, %cst_33 {dimension_numbers = #tpu.dot_dimension_numbers<[1], [1], [0], [0], [0, 0, 1, 0], [], []>} : vector<16x8xf32>, vector<16x8xf32>, vector<16x16xf32> -> vector<16x16xf32>
    %cst_34 = arith.constant 0.353553385 : f32
    %82 = vector.broadcast %cst_34 : f32 to vector<16x16xf32>
    %83 = arith.mulf %81, %82 : vector<16x16xf32>
    %84 = arith.addf %83, %25 : vector<16x16xf32>
    %cst_35 = arith.constant dense<0xFF800000> : vector<16xf32>
    %85 = vector.multi_reduction <maximumf>, %84, %cst_35 [1] : vector<16x16xf32> to vector<16xf32>
    %86 = vector.shape_cast %85 : vector<16xf32> to vector<16x1xf32>
    %87 = vector.broadcast %86 : vector<16x1xf32> to vector<16x16xf32>
    %88 = arith.subf %84, %87 : vector<16x16xf32>
    %89 = math.exp %88 : vector<16x16xf32>
    %cst_36 = arith.constant dense<0.000000e+00> : vector<16xf32>
    %90 = vector.multi_reduction <add>, %89, %cst_36 [1] : vector<16x16xf32> to vector<16xf32>
    %91 = vector.shape_cast %90 : vector<16xf32> to vector<16x1xf32>
    %92 = tpu.reciprocal %91 {approx = true} : vector<16x1xf32> -> vector<16x1xf32>
    %93 = vector.broadcast %92 : vector<16x1xf32> to vector<16x16xf32>
    %94 = arith.mulf %89, %93 : vector<16x16xf32>
    %95 = vector.extract_strided_slice %35 {offsets = [0, 16], sizes = [16, 8], strides = [1, 1]} : vector<16x32xf32> to vector<16x8xf32>
    %cst_37 = arith.constant dense<0.000000e+00> : vector<16x8xf32>
    %96 = tpu.matmul %94, %95, %cst_37 {dimension_numbers = #tpu.dot_dimension_numbers<[1], [0], [0], [1], [0, 0, 1, 1], [], []>} : vector<16x16xf32>, vector<16x8xf32>, vector<16x8xf32> -> vector<16x8xf32>
    %97 = vector.extract_strided_slice %37 {offsets = [16, 0], sizes = [8, 32], strides = [1, 1]} : vector<32x32xf32> to vector<8x32xf32>
    %cst_38 = arith.constant dense<0.000000e+00> : vector<16x32xf32>
    %98 = tpu.matmul %96, %97, %cst_38 {dimension_numbers = #tpu.dot_dimension_numbers<[1], [0], [0], [1], [0, 0, 1, 1], [], []>} : vector<16x8xf32>, vector<8x32xf32>, vector<16x32xf32> -> vector<16x32xf32>
    %99 = arith.addf %78, %98 : vector<16x32xf32>
    %100 = vector.extract_strided_slice %33 {offsets = [0, 24], sizes = [16, 8], strides = [1, 1]} : vector<16x32xf32> to vector<16x8xf32>
    %101 = vector.extract_strided_slice %34 {offsets = [0, 24], sizes = [16, 8], strides = [1, 1]} : vector<16x32xf32> to vector<16x8xf32>
    %cst_39 = arith.constant dense<0.000000e+00> : vector<16x16xf32>
    %102 = tpu.matmul %100, %101, %cst_39 {dimension_numbers = #tpu.dot_dimension_numbers<[1], [1], [0], [0], [0, 0, 1, 0], [], []>} : vector<16x8xf32>, vector<16x8xf32>, vector<16x16xf32> -> vector<16x16xf32>
    %cst_40 = arith.constant 0.353553385 : f32
    %103 = vector.broadcast %cst_40 : f32 to vector<16x16xf32>
    %104 = arith.mulf %102, %103 : vector<16x16xf32>
    %105 = arith.addf %104, %25 : vector<16x16xf32>
    %cst_41 = arith.constant dense<0xFF800000> : vector<16xf32>
    %106 = vector.multi_reduction <maximumf>, %105, %cst_41 [1] : vector<16x16xf32> to vector<16xf32>
    %107 = vector.shape_cast %106 : vector<16xf32> to vector<16x1xf32>
    %108 = vector.broadcast %107 : vector<16x1xf32> to vector<16x16xf32>
    %109 = arith.subf %105, %108 : vector<16x16xf32>
    %110 = math.exp %109 : vector<16x16xf32>
    %cst_42 = arith.constant dense<0.000000e+00> : vector<16xf32>
    %111 = vector.multi_reduction <add>, %110, %cst_42 [1] : vector<16x16xf32> to vector<16xf32>
    %112 = vector.shape_cast %111 : vector<16xf32> to vector<16x1xf32>
    %113 = tpu.reciprocal %112 {approx = true} : vector<16x1xf32> -> vector<16x1xf32>
    %114 = vector.broadcast %113 : vector<16x1xf32> to vector<16x16xf32>
    %115 = arith.mulf %110, %114 : vector<16x16xf32>
    %116 = vector.extract_strided_slice %35 {offsets = [0, 24], sizes = [16, 8], strides = [1, 1]} : vector<16x32xf32> to vector<16x8xf32>
    %cst_43 = arith.constant dense<0.000000e+00> : vector<16x8xf32>
    %117 = tpu.matmul %115, %116, %cst_43 {dimension_numbers = #tpu.dot_dimension_numbers<[1], [0], [0], [1], [0, 0, 1, 1], [], []>} : vector<16x16xf32>, vector<16x8xf32>, vector<16x8xf32> -> vector<16x8xf32>
    %118 = vector.extract_strided_slice %37 {offsets = [24, 0], sizes = [8, 32], strides = [1, 1]} : vector<32x32xf32> to vector<8x32xf32>
    %cst_44 = arith.constant dense<0.000000e+00> : vector<16x32xf32>
    %119 = tpu.matmul %117, %118, %cst_44 {dimension_numbers = #tpu.dot_dimension_numbers<[1], [0], [0], [1], [0, 0, 1, 1], [], []>} : vector<16x8xf32>, vector<8x32xf32>, vector<16x32xf32> -> vector<16x32xf32>
    %120 = arith.addf %99, %119 : vector<16x32xf32>
    %c0_45 = arith.constant 0 : index
    %c0_46 = arith.constant 0 : index
    %c0_47 = arith.constant 0 : index
    %121 = vector.load %arg7[%c0_45, %c0_46, %c0_47] : memref<2x1x32xf32, #tpu.memory_space<vmem>>, vector<1x1x32xf32>
    %122 = vector.shape_cast %121 : vector<1x1x32xf32> to vector<1x32xf32>
    %123 = vector.broadcast %122 : vector<1x32xf32> to vector<16x32xf32>
    %124 = arith.addf %120, %123 : vector<16x32xf32>
    %125 = arith.addf %24, %124 : vector<16x32xf32>
    %c0_48 = arith.constant 0 : index
    %c0_49 = arith.constant 0 : index
    %c0_50 = arith.constant 0 : index
    %126 = vector.load %arg8[%c0_48, %c0_49, %c0_50] : memref<2x1x32xf32, #tpu.memory_space<vmem>>, vector<1x1x32xf32>
    %127 = vector.shape_cast %126 : vector<1x1x32xf32> to vector<1x32xf32>
    %c0_51 = arith.constant 0 : index
    %c0_52 = arith.constant 0 : index
    %c0_53 = arith.constant 0 : index
    %128 = vector.load %arg9[%c0_51, %c0_52, %c0_53] : memref<2x1x32xf32, #tpu.memory_space<vmem>>, vector<1x1x32xf32>
    %129 = vector.shape_cast %128 : vector<1x1x32xf32> to vector<1x32xf32>
    %cst_54 = arith.constant dense<0.000000e+00> : vector<16xf32>
    %130 = vector.multi_reduction <add>, %125, %cst_54 [1] : vector<16x32xf32> to vector<16xf32>
    %131 = vector.shape_cast %130 : vector<16xf32> to vector<16x1xf32>
    %cst_55 = arith.constant 3.200000e+01 : f32
    %132 = vector.broadcast %cst_55 : f32 to vector<16x1xf32>
    %133 = arith.divf %131, %132 : vector<16x1xf32>
    %134 = vector.broadcast %133 : vector<16x1xf32> to vector<16x32xf32>
    %135 = arith.subf %125, %134 : vector<16x32xf32>
    %136 = arith.mulf %135, %135 : vector<16x32xf32>
    %cst_56 = arith.constant dense<0.000000e+00> : vector<16xf32>
    %137 = vector.multi_reduction <add>, %136, %cst_56 [1] : vector<16x32xf32> to vector<16xf32>
    %138 = vector.shape_cast %137 : vector<16xf32> to vector<16x1xf32>
    %cst_57 = arith.constant 3.200000e+01 : f32
    %139 = vector.broadcast %cst_57 : f32 to vector<16x1xf32>
    %140 = arith.divf %138, %139 : vector<16x1xf32>
    %141 = vector.broadcast %133 : vector<16x1xf32> to vector<16x32xf32>
    %142 = arith.subf %125, %141 : vector<16x32xf32>
    %cst_58 = arith.constant 9.99999996E-13 : f32
    %143 = vector.broadcast %cst_58 : f32 to vector<16x1xf32>
    %144 = arith.addf %140, %143 : vector<16x1xf32>
    %145 = math.rsqrt %144 : vector<16x1xf32>
    %146 = vector.broadcast %145 : vector<16x1xf32> to vector<16x32xf32>
    %147 = arith.mulf %142, %146 : vector<16x32xf32>
    %148 = vector.broadcast %127 : vector<1x32xf32> to vector<16x32xf32>
    %149 = arith.mulf %147, %148 : vector<16x32xf32>
    %150 = vector.broadcast %129 : vector<1x32xf32> to vector<16x32xf32>
    %151 = arith.addf %149, %150 : vector<16x32xf32>
    %c0_59 = arith.constant 0 : index
    %c0_60 = arith.constant 0 : index
    %c0_61 = arith.constant 0 : index
    %152 = vector.load %arg10[%c0_59, %c0_60, %c0_61] : memref<2x32x64xf32, #tpu.memory_space<vmem>>, vector<1x32x64xf32>
    %153 = vector.shape_cast %152 : vector<1x32x64xf32> to vector<32x64xf32>
    %cst_62 = arith.constant dense<0.000000e+00> : vector<16x64xf32>
    %154 = tpu.matmul %151, %153, %cst_62 {dimension_numbers = #tpu.dot_dimension_numbers<[1], [0], [0], [1], [0, 0, 1, 1], [], []>} : vector<16x32xf32>, vector<32x64xf32>, vector<16x64xf32> -> vector<16x64xf32>
    %c0_63 = arith.constant 0 : index
    %c0_64 = arith.constant 0 : index
    %c0_65 = arith.constant 0 : index
    %155 = vector.load %arg11[%c0_63, %c0_64, %c0_65] : memref<2x1x64xf32, #tpu.memory_space<vmem>>, vector<1x1x64xf32>
    %156 = vector.shape_cast %155 : vector<1x1x64xf32> to vector<1x64xf32>
    %157 = vector.broadcast %156 : vector<1x64xf32> to vector<16x64xf32>
    %158 = arith.addf %154, %157 : vector<16x64xf32>
    %cst_66 = arith.constant 5.000000e-01 : f32
    %159 = vector.broadcast %cst_66 : f32 to vector<16x64xf32>
    %160 = arith.mulf %159, %158 : vector<16x64xf32>
    %cst_67 = arith.constant 4.471500e-02 : f32
    %161 = vector.broadcast %cst_67 : f32 to vector<16x64xf32>
    %162 = arith.mulf %161, %158 : vector<16x64xf32>
    %163 = arith.mulf %162, %158 : vector<16x64xf32>
    %164 = arith.mulf %163, %158 : vector<16x64xf32>
    %165 = arith.addf %158, %164 : vector<16x64xf32>
    %cst_68 = arith.constant 0.797884583 : f32
    %166 = vector.broadcast %cst_68 : f32 to vector<16x64xf32>
    %167 = arith.mulf %166, %165 : vector<16x64xf32>
    %168 = math.tanh %167 : vector<16x64xf32>
    %cst_69 = arith.constant 1.000000e+00 : f32
    %169 = vector.broadcast %cst_69 : f32 to vector<16x64xf32>
    %170 = arith.addf %169, %168 : vector<16x64xf32>
    %171 = arith.mulf %160, %170 : vector<16x64xf32>
    %c0_70 = arith.constant 0 : index
    %c0_71 = arith.constant 0 : index
    %c0_72 = arith.constant 0 : index
    %172 = vector.load %arg12[%c0_70, %c0_71, %c0_72] : memref<2x64x32xf32, #tpu.memory_space<vmem>>, vector<1x64x32xf32>
    %173 = vector.shape_cast %172 : vector<1x64x32xf32> to vector<64x32xf32>
    %cst_73 = arith.constant dense<0.000000e+00> : vector<16x32xf32>
    %174 = tpu.matmul %171, %173, %cst_73 {dimension_numbers = #tpu.dot_dimension_numbers<[1], [0], [0], [1], [0, 0, 1, 1], [], []>} : vector<16x64xf32>, vector<64x32xf32>, vector<16x32xf32> -> vector<16x32xf32>
    %c0_74 = arith.constant 0 : index
    %c0_75 = arith.constant 0 : index
    %c0_76 = arith.constant 0 : index
    %175 = vector.load %arg13[%c0_74, %c0_75, %c0_76] : memref<2x1x32xf32, #tpu.memory_space<vmem>>, vector<1x1x32xf32>
    %176 = vector.shape_cast %175 : vector<1x1x32xf32> to vector<1x32xf32>
    %177 = vector.broadcast %176 : vector<1x32xf32> to vector<16x32xf32>
    %178 = arith.addf %174, %177 : vector<16x32xf32>
    %179 = arith.addf %151, %178 : vector<16x32xf32>
    %c0_77 = arith.constant 0 : index
    %c0_78 = arith.constant 0 : index
    %c0_79 = arith.constant 0 : index
    %180 = vector.load %arg14[%c0_77, %c0_78, %c0_79] : memref<2x1x32xf32, #tpu.memory_space<vmem>>, vector<1x1x32xf32>
    %181 = vector.shape_cast %180 : vector<1x1x32xf32> to vector<1x32xf32>
    %c0_80 = arith.constant 0 : index
    %c0_81 = arith.constant 0 : index
    %c0_82 = arith.constant 0 : index
    %182 = vector.load %arg15[%c0_80, %c0_81, %c0_82] : memref<2x1x32xf32, #tpu.memory_space<vmem>>, vector<1x1x32xf32>
    %183 = vector.shape_cast %182 : vector<1x1x32xf32> to vector<1x32xf32>
    %cst_83 = arith.constant dense<0.000000e+00> : vector<16xf32>
    %184 = vector.multi_reduction <add>, %179, %cst_83 [1] : vector<16x32xf32> to vector<16xf32>
    %185 = vector.shape_cast %184 : vector<16xf32> to vector<16x1xf32>
    %cst_84 = arith.constant 3.200000e+01 : f32
    %186 = vector.broadcast %cst_84 : f32 to vector<16x1xf32>
    %187 = arith.divf %185, %186 : vector<16x1xf32>
    %188 = vector.broadcast %187 : vector<16x1xf32> to vector<16x32xf32>
    %189 = arith.subf %179, %188 : vector<16x32xf32>
    %190 = arith.mulf %189, %189 : vector<16x32xf32>
    %cst_85 = arith.constant dense<0.000000e+00> : vector<16xf32>
    %191 = vector.multi_reduction <add>, %190, %cst_85 [1] : vector<16x32xf32> to vector<16xf32>
    %192 = vector.shape_cast %191 : vector<16xf32> to vector<16x1xf32>
    %cst_86 = arith.constant 3.200000e+01 : f32
    %193 = vector.broadcast %cst_86 : f32 to vector<16x1xf32>
    %194 = arith.divf %192, %193 : vector<16x1xf32>
    %195 = vector.broadcast %187 : vector<16x1xf32> to vector<16x32xf32>
    %196 = arith.subf %179, %195 : vector<16x32xf32>
    %cst_87 = arith.constant 9.99999996E-13 : f32
    %197 = vector.broadcast %cst_87 : f32 to vector<16x1xf32>
    %198 = arith.addf %194, %197 : vector<16x1xf32>
    %199 = math.rsqrt %198 : vector<16x1xf32>
    %200 = vector.broadcast %199 : vector<16x1xf32> to vector<16x32xf32>
    %201 = arith.mulf %196, %200 : vector<16x32xf32>
    %202 = vector.broadcast %181 : vector<1x32xf32> to vector<16x32xf32>
    %203 = arith.mulf %201, %202 : vector<16x32xf32>
    %204 = vector.broadcast %183 : vector<1x32xf32> to vector<16x32xf32>
    %205 = arith.addf %203, %204 : vector<16x32xf32>
    %c1 = arith.constant 1 : index
    %c0_88 = arith.constant 0 : index
    %c0_89 = arith.constant 0 : index
    %206 = vector.load %arg4[%c1, %c0_88, %c0_89] : memref<2x32x96xf32, #tpu.memory_space<vmem>>, vector<1x32x96xf32>
    %207 = vector.shape_cast %206 : vector<1x32x96xf32> to vector<32x96xf32>
    %cst_90 = arith.constant dense<0.000000e+00> : vector<16x96xf32>
    %208 = tpu.matmul %205, %207, %cst_90 {dimension_numbers = #tpu.dot_dimension_numbers<[1], [0], [0], [1], [0, 0, 1, 1], [], []>} : vector<16x32xf32>, vector<32x96xf32>, vector<16x96xf32> -> vector<16x96xf32>
    %c1_91 = arith.constant 1 : index
    %c0_92 = arith.constant 0 : index
    %c0_93 = arith.constant 0 : index
    %209 = vector.load %arg5[%c1_91, %c0_92, %c0_93] : memref<2x1x96xf32, #tpu.memory_space<vmem>>, vector<1x1x96xf32>
    %210 = vector.shape_cast %209 : vector<1x1x96xf32> to vector<1x96xf32>
    %211 = vector.broadcast %210 : vector<1x96xf32> to vector<16x96xf32>
    %212 = arith.addf %208, %211 : vector<16x96xf32>
    %213 = vector.extract_strided_slice %212 {offsets = [0, 0], sizes = [16, 32], strides = [1, 1]} : vector<16x96xf32> to vector<16x32xf32>
    %214 = vector.extract_strided_slice %212 {offsets = [0, 32], sizes = [16, 32], strides = [1, 1]} : vector<16x96xf32> to vector<16x32xf32>
    %215 = vector.extract_strided_slice %212 {offsets = [0, 64], sizes = [16, 32], strides = [1, 1]} : vector<16x96xf32> to vector<16x32xf32>
    %c1_94 = arith.constant 1 : index
    %c0_95 = arith.constant 0 : index
    %c0_96 = arith.constant 0 : index
    %216 = vector.load %arg6[%c1_94, %c0_95, %c0_96] : memref<2x32x32xf32, #tpu.memory_space<vmem>>, vector<1x32x32xf32>
    %217 = vector.shape_cast %216 : vector<1x32x32xf32> to vector<32x32xf32>
    %218 = vector.extract_strided_slice %213 {offsets = [0, 0], sizes = [16, 8], strides = [1, 1]} : vector<16x32xf32> to vector<16x8xf32>
    %219 = vector.extract_strided_slice %214 {offsets = [0, 0], sizes = [16, 8], strides = [1, 1]} : vector<16x32xf32> to vector<16x8xf32>
    %cst_97 = arith.constant dense<0.000000e+00> : vector<16x16xf32>
    %220 = tpu.matmul %218, %219, %cst_97 {dimension_numbers = #tpu.dot_dimension_numbers<[1], [1], [0], [0], [0, 0, 1, 0], [], []>} : vector<16x8xf32>, vector<16x8xf32>, vector<16x16xf32> -> vector<16x16xf32>
    %cst_98 = arith.constant 0.353553385 : f32
    %221 = vector.broadcast %cst_98 : f32 to vector<16x16xf32>
    %222 = arith.mulf %220, %221 : vector<16x16xf32>
    %223 = arith.addf %222, %25 : vector<16x16xf32>
    %cst_99 = arith.constant dense<0xFF800000> : vector<16xf32>
    %224 = vector.multi_reduction <maximumf>, %223, %cst_99 [1] : vector<16x16xf32> to vector<16xf32>
    %225 = vector.shape_cast %224 : vector<16xf32> to vector<16x1xf32>
    %226 = vector.broadcast %225 : vector<16x1xf32> to vector<16x16xf32>
    %227 = arith.subf %223, %226 : vector<16x16xf32>
    %228 = math.exp %227 : vector<16x16xf32>
    %cst_100 = arith.constant dense<0.000000e+00> : vector<16xf32>
    %229 = vector.multi_reduction <add>, %228, %cst_100 [1] : vector<16x16xf32> to vector<16xf32>
    %230 = vector.shape_cast %229 : vector<16xf32> to vector<16x1xf32>
    %231 = tpu.reciprocal %230 {approx = true} : vector<16x1xf32> -> vector<16x1xf32>
    %232 = vector.broadcast %231 : vector<16x1xf32> to vector<16x16xf32>
    %233 = arith.mulf %228, %232 : vector<16x16xf32>
    %234 = vector.extract_strided_slice %215 {offsets = [0, 0], sizes = [16, 8], strides = [1, 1]} : vector<16x32xf32> to vector<16x8xf32>
    %cst_101 = arith.constant dense<0.000000e+00> : vector<16x8xf32>
    %235 = tpu.matmul %233, %234, %cst_101 {dimension_numbers = #tpu.dot_dimension_numbers<[1], [0], [0], [1], [0, 0, 1, 1], [], []>} : vector<16x16xf32>, vector<16x8xf32>, vector<16x8xf32> -> vector<16x8xf32>
    %236 = vector.extract_strided_slice %217 {offsets = [0, 0], sizes = [8, 32], strides = [1, 1]} : vector<32x32xf32> to vector<8x32xf32>
    %cst_102 = arith.constant dense<0.000000e+00> : vector<16x32xf32>
    %237 = tpu.matmul %235, %236, %cst_102 {dimension_numbers = #tpu.dot_dimension_numbers<[1], [0], [0], [1], [0, 0, 1, 1], [], []>} : vector<16x8xf32>, vector<8x32xf32>, vector<16x32xf32> -> vector<16x32xf32>
    %238 = vector.extract_strided_slice %213 {offsets = [0, 8], sizes = [16, 8], strides = [1, 1]} : vector<16x32xf32> to vector<16x8xf32>
    %239 = vector.extract_strided_slice %214 {offsets = [0, 8], sizes = [16, 8], strides = [1, 1]} : vector<16x32xf32> to vector<16x8xf32>
    %cst_103 = arith.constant dense<0.000000e+00> : vector<16x16xf32>
    %240 = tpu.matmul %238, %239, %cst_103 {dimension_numbers = #tpu.dot_dimension_numbers<[1], [1], [0], [0], [0, 0, 1, 0], [], []>} : vector<16x8xf32>, vector<16x8xf32>, vector<16x16xf32> -> vector<16x16xf32>
    %cst_104 = arith.constant 0.353553385 : f32
    %241 = vector.broadcast %cst_104 : f32 to vector<16x16xf32>
    %242 = arith.mulf %240, %241 : vector<16x16xf32>
    %243 = arith.addf %242, %25 : vector<16x16xf32>
    %cst_105 = arith.constant dense<0xFF800000> : vector<16xf32>
    %244 = vector.multi_reduction <maximumf>, %243, %cst_105 [1] : vector<16x16xf32> to vector<16xf32>
    %245 = vector.shape_cast %244 : vector<16xf32> to vector<16x1xf32>
    %246 = vector.broadcast %245 : vector<16x1xf32> to vector<16x16xf32>
    %247 = arith.subf %243, %246 : vector<16x16xf32>
    %248 = math.exp %247 : vector<16x16xf32>
    %cst_106 = arith.constant dense<0.000000e+00> : vector<16xf32>
    %249 = vector.multi_reduction <add>, %248, %cst_106 [1] : vector<16x16xf32> to vector<16xf32>
    %250 = vector.shape_cast %249 : vector<16xf32> to vector<16x1xf32>
    %251 = tpu.reciprocal %250 {approx = true} : vector<16x1xf32> -> vector<16x1xf32>
    %252 = vector.broadcast %251 : vector<16x1xf32> to vector<16x16xf32>
    %253 = arith.mulf %248, %252 : vector<16x16xf32>
    %254 = vector.extract_strided_slice %215 {offsets = [0, 8], sizes = [16, 8], strides = [1, 1]} : vector<16x32xf32> to vector<16x8xf32>
    %cst_107 = arith.constant dense<0.000000e+00> : vector<16x8xf32>
    %255 = tpu.matmul %253, %254, %cst_107 {dimension_numbers = #tpu.dot_dimension_numbers<[1], [0], [0], [1], [0, 0, 1, 1], [], []>} : vector<16x16xf32>, vector<16x8xf32>, vector<16x8xf32> -> vector<16x8xf32>
    %256 = vector.extract_strided_slice %217 {offsets = [8, 0], sizes = [8, 32], strides = [1, 1]} : vector<32x32xf32> to vector<8x32xf32>
    %cst_108 = arith.constant dense<0.000000e+00> : vector<16x32xf32>
    %257 = tpu.matmul %255, %256, %cst_108 {dimension_numbers = #tpu.dot_dimension_numbers<[1], [0], [0], [1], [0, 0, 1, 1], [], []>} : vector<16x8xf32>, vector<8x32xf32>, vector<16x32xf32> -> vector<16x32xf32>
    %258 = arith.addf %237, %257 : vector<16x32xf32>
    %259 = vector.extract_strided_slice %213 {offsets = [0, 16], sizes = [16, 8], strides = [1, 1]} : vector<16x32xf32> to vector<16x8xf32>
    %260 = vector.extract_strided_slice %214 {offsets = [0, 16], sizes = [16, 8], strides = [1, 1]} : vector<16x32xf32> to vector<16x8xf32>
    %cst_109 = arith.constant dense<0.000000e+00> : vector<16x16xf32>
    %261 = tpu.matmul %259, %260, %cst_109 {dimension_numbers = #tpu.dot_dimension_numbers<[1], [1], [0], [0], [0, 0, 1, 0], [], []>} : vector<16x8xf32>, vector<16x8xf32>, vector<16x16xf32> -> vector<16x16xf32>
    %cst_110 = arith.constant 0.353553385 : f32
    %262 = vector.broadcast %cst_110 : f32 to vector<16x16xf32>
    %263 = arith.mulf %261, %262 : vector<16x16xf32>
    %264 = arith.addf %263, %25 : vector<16x16xf32>
    %cst_111 = arith.constant dense<0xFF800000> : vector<16xf32>
    %265 = vector.multi_reduction <maximumf>, %264, %cst_111 [1] : vector<16x16xf32> to vector<16xf32>
    %266 = vector.shape_cast %265 : vector<16xf32> to vector<16x1xf32>
    %267 = vector.broadcast %266 : vector<16x1xf32> to vector<16x16xf32>
    %268 = arith.subf %264, %267 : vector<16x16xf32>
    %269 = math.exp %268 : vector<16x16xf32>
    %cst_112 = arith.constant dense<0.000000e+00> : vector<16xf32>
    %270 = vector.multi_reduction <add>, %269, %cst_112 [1] : vector<16x16xf32> to vector<16xf32>
    %271 = vector.shape_cast %270 : vector<16xf32> to vector<16x1xf32>
    %272 = tpu.reciprocal %271 {approx = true} : vector<16x1xf32> -> vector<16x1xf32>
    %273 = vector.broadcast %272 : vector<16x1xf32> to vector<16x16xf32>
    %274 = arith.mulf %269, %273 : vector<16x16xf32>
    %275 = vector.extract_strided_slice %215 {offsets = [0, 16], sizes = [16, 8], strides = [1, 1]} : vector<16x32xf32> to vector<16x8xf32>
    %cst_113 = arith.constant dense<0.000000e+00> : vector<16x8xf32>
    %276 = tpu.matmul %274, %275, %cst_113 {dimension_numbers = #tpu.dot_dimension_numbers<[1], [0], [0], [1], [0, 0, 1, 1], [], []>} : vector<16x16xf32>, vector<16x8xf32>, vector<16x8xf32> -> vector<16x8xf32>
    %277 = vector.extract_strided_slice %217 {offsets = [16, 0], sizes = [8, 32], strides = [1, 1]} : vector<32x32xf32> to vector<8x32xf32>
    %cst_114 = arith.constant dense<0.000000e+00> : vector<16x32xf32>
    %278 = tpu.matmul %276, %277, %cst_114 {dimension_numbers = #tpu.dot_dimension_numbers<[1], [0], [0], [1], [0, 0, 1, 1], [], []>} : vector<16x8xf32>, vector<8x32xf32>, vector<16x32xf32> -> vector<16x32xf32>
    %279 = arith.addf %258, %278 : vector<16x32xf32>
    %280 = vector.extract_strided_slice %213 {offsets = [0, 24], sizes = [16, 8], strides = [1, 1]} : vector<16x32xf32> to vector<16x8xf32>
    %281 = vector.extract_strided_slice %214 {offsets = [0, 24], sizes = [16, 8], strides = [1, 1]} : vector<16x32xf32> to vector<16x8xf32>
    %cst_115 = arith.constant dense<0.000000e+00> : vector<16x16xf32>
    %282 = tpu.matmul %280, %281, %cst_115 {dimension_numbers = #tpu.dot_dimension_numbers<[1], [1], [0], [0], [0, 0, 1, 0], [], []>} : vector<16x8xf32>, vector<16x8xf32>, vector<16x16xf32> -> vector<16x16xf32>
    %cst_116 = arith.constant 0.353553385 : f32
    %283 = vector.broadcast %cst_116 : f32 to vector<16x16xf32>
    %284 = arith.mulf %282, %283 : vector<16x16xf32>
    %285 = arith.addf %284, %25 : vector<16x16xf32>
    %cst_117 = arith.constant dense<0xFF800000> : vector<16xf32>
    %286 = vector.multi_reduction <maximumf>, %285, %cst_117 [1] : vector<16x16xf32> to vector<16xf32>
    %287 = vector.shape_cast %286 : vector<16xf32> to vector<16x1xf32>
    %288 = vector.broadcast %287 : vector<16x1xf32> to vector<16x16xf32>
    %289 = arith.subf %285, %288 : vector<16x16xf32>
    %290 = math.exp %289 : vector<16x16xf32>
    %cst_118 = arith.constant dense<0.000000e+00> : vector<16xf32>
    %291 = vector.multi_reduction <add>, %290, %cst_118 [1] : vector<16x16xf32> to vector<16xf32>
    %292 = vector.shape_cast %291 : vector<16xf32> to vector<16x1xf32>
    %293 = tpu.reciprocal %292 {approx = true} : vector<16x1xf32> -> vector<16x1xf32>
    %294 = vector.broadcast %293 : vector<16x1xf32> to vector<16x16xf32>
    %295 = arith.mulf %290, %294 : vector<16x16xf32>
    %296 = vector.extract_strided_slice %215 {offsets = [0, 24], sizes = [16, 8], strides = [1, 1]} : vector<16x32xf32> to vector<16x8xf32>
    %cst_119 = arith.constant dense<0.000000e+00> : vector<16x8xf32>
    %297 = tpu.matmul %295, %296, %cst_119 {dimension_numbers = #tpu.dot_dimension_numbers<[1], [0], [0], [1], [0, 0, 1, 1], [], []>} : vector<16x16xf32>, vector<16x8xf32>, vector<16x8xf32> -> vector<16x8xf32>
    %298 = vector.extract_strided_slice %217 {offsets = [24, 0], sizes = [8, 32], strides = [1, 1]} : vector<32x32xf32> to vector<8x32xf32>
    %cst_120 = arith.constant dense<0.000000e+00> : vector<16x32xf32>
    %299 = tpu.matmul %297, %298, %cst_120 {dimension_numbers = #tpu.dot_dimension_numbers<[1], [0], [0], [1], [0, 0, 1, 1], [], []>} : vector<16x8xf32>, vector<8x32xf32>, vector<16x32xf32> -> vector<16x32xf32>
    %300 = arith.addf %279, %299 : vector<16x32xf32>
    %c1_121 = arith.constant 1 : index
    %c0_122 = arith.constant 0 : index
    %c0_123 = arith.constant 0 : index
    %301 = vector.load %arg7[%c1_121, %c0_122, %c0_123] : memref<2x1x32xf32, #tpu.memory_space<vmem>>, vector<1x1x32xf32>
    %302 = vector.shape_cast %301 : vector<1x1x32xf32> to vector<1x32xf32>
    %303 = vector.broadcast %302 : vector<1x32xf32> to vector<16x32xf32>
    %304 = arith.addf %300, %303 : vector<16x32xf32>
    %305 = arith.addf %205, %304 : vector<16x32xf32>
    %c1_124 = arith.constant 1 : index
    %c0_125 = arith.constant 0 : index
    %c0_126 = arith.constant 0 : index
    %306 = vector.load %arg8[%c1_124, %c0_125, %c0_126] : memref<2x1x32xf32, #tpu.memory_space<vmem>>, vector<1x1x32xf32>
    %307 = vector.shape_cast %306 : vector<1x1x32xf32> to vector<1x32xf32>
    %c1_127 = arith.constant 1 : index
    %c0_128 = arith.constant 0 : index
    %c0_129 = arith.constant 0 : index
    %308 = vector.load %arg9[%c1_127, %c0_128, %c0_129] : memref<2x1x32xf32, #tpu.memory_space<vmem>>, vector<1x1x32xf32>
    %309 = vector.shape_cast %308 : vector<1x1x32xf32> to vector<1x32xf32>
    %cst_130 = arith.constant dense<0.000000e+00> : vector<16xf32>
    %310 = vector.multi_reduction <add>, %305, %cst_130 [1] : vector<16x32xf32> to vector<16xf32>
    %311 = vector.shape_cast %310 : vector<16xf32> to vector<16x1xf32>
    %cst_131 = arith.constant 3.200000e+01 : f32
    %312 = vector.broadcast %cst_131 : f32 to vector<16x1xf32>
    %313 = arith.divf %311, %312 : vector<16x1xf32>
    %314 = vector.broadcast %313 : vector<16x1xf32> to vector<16x32xf32>
    %315 = arith.subf %305, %314 : vector<16x32xf32>
    %316 = arith.mulf %315, %315 : vector<16x32xf32>
    %cst_132 = arith.constant dense<0.000000e+00> : vector<16xf32>
    %317 = vector.multi_reduction <add>, %316, %cst_132 [1] : vector<16x32xf32> to vector<16xf32>
    %318 = vector.shape_cast %317 : vector<16xf32> to vector<16x1xf32>
    %cst_133 = arith.constant 3.200000e+01 : f32
    %319 = vector.broadcast %cst_133 : f32 to vector<16x1xf32>
    %320 = arith.divf %318, %319 : vector<16x1xf32>
    %321 = vector.broadcast %313 : vector<16x1xf32> to vector<16x32xf32>
    %322 = arith.subf %305, %321 : vector<16x32xf32>
    %cst_134 = arith.constant 9.99999996E-13 : f32
    %323 = vector.broadcast %cst_134 : f32 to vector<16x1xf32>
    %324 = arith.addf %320, %323 : vector<16x1xf32>
    %325 = math.rsqrt %324 : vector<16x1xf32>
    %326 = vector.broadcast %325 : vector<16x1xf32> to vector<16x32xf32>
    %327 = arith.mulf %322, %326 : vector<16x32xf32>
    %328 = vector.broadcast %307 : vector<1x32xf32> to vector<16x32xf32>
    %329 = arith.mulf %327, %328 : vector<16x32xf32>
    %330 = vector.broadcast %309 : vector<1x32xf32> to vector<16x32xf32>
    %331 = arith.addf %329, %330 : vector<16x32xf32>
    %c1_135 = arith.constant 1 : index
    %c0_136 = arith.constant 0 : index
    %c0_137 = arith.constant 0 : index
    %332 = vector.load %arg10[%c1_135, %c0_136, %c0_137] : memref<2x32x64xf32, #tpu.memory_space<vmem>>, vector<1x32x64xf32>
    %333 = vector.shape_cast %332 : vector<1x32x64xf32> to vector<32x64xf32>
    %cst_138 = arith.constant dense<0.000000e+00> : vector<16x64xf32>
    %334 = tpu.matmul %331, %333, %cst_138 {dimension_numbers = #tpu.dot_dimension_numbers<[1], [0], [0], [1], [0, 0, 1, 1], [], []>} : vector<16x32xf32>, vector<32x64xf32>, vector<16x64xf32> -> vector<16x64xf32>
    %c1_139 = arith.constant 1 : index
    %c0_140 = arith.constant 0 : index
    %c0_141 = arith.constant 0 : index
    %335 = vector.load %arg11[%c1_139, %c0_140, %c0_141] : memref<2x1x64xf32, #tpu.memory_space<vmem>>, vector<1x1x64xf32>
    %336 = vector.shape_cast %335 : vector<1x1x64xf32> to vector<1x64xf32>
    %337 = vector.broadcast %336 : vector<1x64xf32> to vector<16x64xf32>
    %338 = arith.addf %334, %337 : vector<16x64xf32>
    %cst_142 = arith.constant 5.000000e-01 : f32
    %339 = vector.broadcast %cst_142 : f32 to vector<16x64xf32>
    %340 = arith.mulf %339, %338 : vector<16x64xf32>
    %cst_143 = arith.constant 4.471500e-02 : f32
    %341 = vector.broadcast %cst_143 : f32 to vector<16x64xf32>
    %342 = arith.mulf %341, %338 : vector<16x64xf32>
    %343 = arith.mulf %342, %338 : vector<16x64xf32>
    %344 = arith.mulf %343, %338 : vector<16x64xf32>
    %345 = arith.addf %338, %344 : vector<16x64xf32>
    %cst_144 = arith.constant 0.797884583 : f32
    %346 = vector.broadcast %cst_144 : f32 to vector<16x64xf32>
    %347 = arith.mulf %346, %345 : vector<16x64xf32>
    %348 = math.tanh %347 : vector<16x64xf32>
    %cst_145 = arith.constant 1.000000e+00 : f32
    %349 = vector.broadcast %cst_145 : f32 to vector<16x64xf32>
    %350 = arith.addf %349, %348 : vector<16x64xf32>
    %351 = arith.mulf %340, %350 : vector<16x64xf32>
    %c1_146 = arith.constant 1 : index
    %c0_147 = arith.constant 0 : index
    %c0_148 = arith.constant 0 : index
    %352 = vector.load %arg12[%c1_146, %c0_147, %c0_148] : memref<2x64x32xf32, #tpu.memory_space<vmem>>, vector<1x64x32xf32>
    %353 = vector.shape_cast %352 : vector<1x64x32xf32> to vector<64x32xf32>
    %cst_149 = arith.constant dense<0.000000e+00> : vector<16x32xf32>
    %354 = tpu.matmul %351, %353, %cst_149 {dimension_numbers = #tpu.dot_dimension_numbers<[1], [0], [0], [1], [0, 0, 1, 1], [], []>} : vector<16x64xf32>, vector<64x32xf32>, vector<16x32xf32> -> vector<16x32xf32>
    %c1_150 = arith.constant 1 : index
    %c0_151 = arith.constant 0 : index
    %c0_152 = arith.constant 0 : index
    %355 = vector.load %arg13[%c1_150, %c0_151, %c0_152] : memref<2x1x32xf32, #tpu.memory_space<vmem>>, vector<1x1x32xf32>
    %356 = vector.shape_cast %355 : vector<1x1x32xf32> to vector<1x32xf32>
    %357 = vector.broadcast %356 : vector<1x32xf32> to vector<16x32xf32>
    %358 = arith.addf %354, %357 : vector<16x32xf32>
    %359 = arith.addf %331, %358 : vector<16x32xf32>
    %c1_153 = arith.constant 1 : index
    %c0_154 = arith.constant 0 : index
    %c0_155 = arith.constant 0 : index
    %360 = vector.load %arg14[%c1_153, %c0_154, %c0_155] : memref<2x1x32xf32, #tpu.memory_space<vmem>>, vector<1x1x32xf32>
    %361 = vector.shape_cast %360 : vector<1x1x32xf32> to vector<1x32xf32>
    %c1_156 = arith.constant 1 : index
    %c0_157 = arith.constant 0 : index
    %c0_158 = arith.constant 0 : index
    %362 = vector.load %arg15[%c1_156, %c0_157, %c0_158] : memref<2x1x32xf32, #tpu.memory_space<vmem>>, vector<1x1x32xf32>
    %363 = vector.shape_cast %362 : vector<1x1x32xf32> to vector<1x32xf32>
    %cst_159 = arith.constant dense<0.000000e+00> : vector<16xf32>
    %364 = vector.multi_reduction <add>, %359, %cst_159 [1] : vector<16x32xf32> to vector<16xf32>
    %365 = vector.shape_cast %364 : vector<16xf32> to vector<16x1xf32>
    %cst_160 = arith.constant 3.200000e+01 : f32
    %366 = vector.broadcast %cst_160 : f32 to vector<16x1xf32>
    %367 = arith.divf %365, %366 : vector<16x1xf32>
    %368 = vector.broadcast %367 : vector<16x1xf32> to vector<16x32xf32>
    %369 = arith.subf %359, %368 : vector<16x32xf32>
    %370 = arith.mulf %369, %369 : vector<16x32xf32>
    %cst_161 = arith.constant dense<0.000000e+00> : vector<16xf32>
    %371 = vector.multi_reduction <add>, %370, %cst_161 [1] : vector<16x32xf32> to vector<16xf32>
    %372 = vector.shape_cast %371 : vector<16xf32> to vector<16x1xf32>
    %cst_162 = arith.constant 3.200000e+01 : f32
    %373 = vector.broadcast %cst_162 : f32 to vector<16x1xf32>
    %374 = arith.divf %372, %373 : vector<16x1xf32>
    %375 = vector.broadcast %367 : vector<16x1xf32> to vector<16x32xf32>
    %376 = arith.subf %359, %375 : vector<16x32xf32>
    %cst_163 = arith.constant 9.99999996E-13 : f32
    %377 = vector.broadcast %cst_163 : f32 to vector<16x1xf32>
    %378 = arith.addf %374, %377 : vector<16x1xf32>
    %379 = math.rsqrt %378 : vector<16x1xf32>
    %380 = vector.broadcast %379 : vector<16x1xf32> to vector<16x32xf32>
    %381 = arith.mulf %376, %380 : vector<16x32xf32>
    %382 = vector.broadcast %361 : vector<1x32xf32> to vector<16x32xf32>
    %383 = arith.mulf %381, %382 : vector<16x32xf32>
    %384 = vector.broadcast %363 : vector<1x32xf32> to vector<16x32xf32>
    %385 = arith.addf %383, %384 : vector<16x32xf32>
    %c0_164 = arith.constant 0 : index
    %c0_165 = arith.constant 0 : index
    %386 = vector.load %arg18[%c0_164, %c0_165] : memref<16x32xf32, #tpu.memory_space<vmem>>, vector<16x32xf32>
    tpu.vector_store %arg18[%c0_164, %c0_165], %385 {strides = array<i32>} : memref<16x32xf32, #tpu.memory_space<vmem>>, vector<16x32xf32>,
    %387 = vector.extract_strided_slice %385 {offsets = [0, 0], sizes = [1, 32], strides = [1, 1]} : vector<16x32xf32> to vector<1x32xf32>
    %388 = vector.extract_strided_slice %385 {offsets = [8, 0], sizes = [1, 32], strides = [1, 1]} : vector<16x32xf32> to vector<1x32xf32>
    %389 = tpu.concatenate %387, %388 in 0 : vector<1x32xf32>, vector<1x32xf32> -> vector<2x32xf32>
    %c0_166 = arith.constant 0 : index
    %c0_167 = arith.constant 0 : index
    %390 = vector.load %arg16[%c0_166, %c0_167] : memref<32x32xf32, #tpu.memory_space<vmem>>, vector<32x32xf32>
    %cst_168 = arith.constant dense<0.000000e+00> : vector<2x32xf32>
    %391 = tpu.matmul %389, %390, %cst_168 {dimension_numbers = #tpu.dot_dimension_numbers<[1], [0], [0], [1], [0, 0, 1, 1], [], []>} : vector<2x32xf32>, vector<32x32xf32>, vector<2x32xf32> -> vector<2x32xf32>
    %c0_169 = arith.constant 0 : index
    %c0_170 = arith.constant 0 : index
    %392 = vector.load %arg17[%c0_169, %c0_170] : memref<1x32xf32, #tpu.memory_space<vmem>>, vector<1x32xf32>
    %393 = vector.broadcast %392 : vector<1x32xf32> to vector<2x32xf32>
    %394 = arith.addf %391, %393 : vector<2x32xf32>
    %395 = math.tanh %394 : vector<2x32xf32>
    %c0_171 = arith.constant 0 : index
    %c0_172 = arith.constant 0 : index
    %396 = vector.load %arg19[%c0_171, %c0_172] : memref<2x32xf32, #tpu.memory_space<vmem>>, vector<2x32xf32>
    tpu.vector_store %arg19[%c0_171, %c0_172], %395 {strides = array<i32>} : memref<2x32xf32, #tpu.memory_space<vmem>>, vector<2x32xf32>,
    return
  }
}

</mosaic_0001>

<bundles_post_ra>
// kernel: encoder_forward.1
= control target key start
LH: loop header
LB: loop body
LE: loop exit
PB: predicated region body
PF: predicated region fallthrough
CT: control target
= control target key end

     0   :  { %s4874_s0 = inlined_call_operand.vmem [shape: f32[16,32], index: 0, kind: input, shape index: {}]   ;;  %s4875_s1 = inlined_call_operand.vmem [shape: f32[16,16], index: 1, kind: input, shape index: {}]   ;;  %s4876_s2 = inlined_call_operand.vmem [shape: f32[1,32], index: 2, kind: input, shape index: {}]   ;;  %s4877_s3 = inlined_call_operand.vmem [shape: f32[1,32], index: 3, kind: input, shape index: {}]   ;;  %s4878_s4 = inlined_call_operand.vmem [shape: f32[2,32,96], index: 4, kind: input, shape index: {}]   ;;  %s4879_s5 = inlined_call_operand.vmem [shape: f32[2,1,96], index: 5, kind: input, shape index: {}]   ;;  %s4880_s6 = inlined_call_operand.vmem [shape: f32[2,32,32], index: 6, kind: input, shape index: {}]   ;;  %s4881_s7 = inlined_call_operand.vmem [shape: f32[2,1,32], index: 7, kind: input, shape index: {}]   ;;  %s4882_s8 = inlined_call_operand.vmem [shape: f32[2,1,32], index: 8, kind: input, shape index: {}]   ;;  %s4883_s9 = inlined_call_operand.vmem [shape: f32[2,1,32], index: 9, kind: input, shape index: {}]   ;;  %s4884_s10 = inlined_call_operand.vmem [shape: f32[2,32,64], index: 10, kind: input, shape index: {}]   ;;  %s4885_s11 = inlined_call_operand.vmem [shape: f32[2,1,64], index: 11, kind: input, shape index: {}]   ;;  %s4886_s12 = inlined_call_operand.vmem [shape: f32[2,64,32], index: 12, kind: input, shape index: {}]   ;;  %s4887_s13 = inlined_call_operand.vmem [shape: f32[2,1,32], index: 13, kind: input, shape index: {}]   ;;  %s4888_s14 = inlined_call_operand.vmem [shape: f32[2,1,32], index: 14, kind: input, shape index: {}]   ;;  %s4889_s15 = inlined_call_operand.vmem [shape: f32[2,1,32], index: 15, kind: input, shape index: {}]   ;;  %s4890_s16 = inlined_call_operand.vmem [shape: f32[32,32], index: 16, kind: input, shape index: {}]   ;;  %s4891_s17 = inlined_call_operand.vmem [shape: f32[1,32], index: 17, kind: input, shape index: {}]   ;;  %s4892_s18 = inlined_call_operand.hbm [shape: f32[16,32], index: 18, kind: output, shape index: {0}]   ;;  %s4893_s19 = inlined_call_operand.hbm [shape: f32[2,32], index: 19, kind: output, shape index: {1}]  }
   0x1   :  { %4905 = sst [smem:[#allocation8_spill]] %s4874_s0 }
   0x2   :  { %4906 = sst [smem:[#allocation9_spill]] %s4875_s1 }
   0x3   :  { %4907 = sst [smem:[#allocation10_spill]] %s4876_s2 }
   0x4   :  { %4908 = sst [smem:[#allocation11_spill]] %s4877_s3 }
   0x5   :  { %25 = vsyncpa [#allocation3], 0  ;;  %s4909_s20 = sld [smem:[#allocation8_spill]]  ;;  %vm67_vm0 = vcmask 261120  }
   0xb   :  { %v63_v0 = vld [vmem:[%s4909_s20] sm:$0xff]  ;;  %v64_v1 = vld [vmem:[%s4909_s20 + $0x8] sm:$0xff] }
   0xc   :  { %26 = vsyncpa [#allocation5], 0  ;;  %v68_v2 = vsel %vm67_vm0, %v63_v0, 0.0  ;;  %v71_v3 = vsel %vm67_vm0, %v64_v1, 0.0  ;;  %v113_v14 = vld [vmem:[%s4878_s4] sm:$0xff]  ;;  %v114_v15 = vld [vmem:[%s4878_s4 + $0x8] sm:$0xff] }
   0xd   :  { %69 = vadd.xlane.f32.xlu0 %v68_v2  ;;  %v115_v16 = vld [vmem:[%s4878_s4 + $0x10] sm:$0xff]  ;;  %v3848_v17 = vpack.c.bf16 %v114_v15, %v113_v14  ;;  %v116_v18 = vld [vmem:[%s4878_s4 + $0x18] sm:$0xff]  ;;  %s4910_s0 = sld [smem:[#allocation10_spill]]  ;;  %s4911_s21 = sld [smem:[#allocation11_spill]]  ;;  %v3344_v36 = vld [vmem:[%s4879_s5] ss:$0 sm:$0xff] }
   0xe   :  { %v3852_v19 = vpack.c.bf16 %v116_v18, %v115_v16  ;;  %vm215_vm1 = vcmask 64512   ;;  %s4252_s2 = smov 96   ;;  %s4253_s23 = smov 88   ;;  %vm303_vm3 = vcmask 130048   ;;  %vm1533_vm4 = vcmask 523264  }
   0xf   :  { %3849 = vmatprep.subr.bf16.mxu0 %v3848_v17  ;;  %s4254_s24 = smov 120   ;;  %s4903_s25 = smov 112   ;;  %vm4431_vm2 = vmpackc.low %vm215_vm1, %vm215_vm1  ;;  %vm4264_vm5 = vmmov 0   ;;  %vm3223_vm6 = vcmask 1040384  }
  0x10   :  { %3851 = vmatpush3.bf16.msra.mxu0 %v3848_v17  ;;  %s4914_s27 = sld [smem:[#allocation9_spill]]  ;;  %s4257_s30 = smov 80  }
  0x11   :  { %72 = vadd.xlane.f32.xlu0 %v71_v3  ;;  %3853 = vmatprep.subr.bf16.mxu0 %v3852_v19  ;;  %s4901_s20 = smov 72   ;;  %s4898_s1 = smov 56  }
  0x12   :  { %s4897_s22 = smov 48   ;;  %s4896_s3 = smov 40  }
  0x13   :  { %v3342_v27 = vld [vmem:[%s4910_s0] ss:$0 sm:$0xff]  ;;  %s4902_s0 = smov 64  }
  0x14   :  { %3855 = vmatpush3.bf16.msra.mxu0 %v3852_v19  ;;  %v3343_v29 = vld [vmem:[%s4911_s21] ss:$0 sm:$0xff]  ;;  %s4899_s21 = smov 104  }
  0x16   :  { %v4444_v49 = vld [vmem:[%s4914_s27] sm:$0xff]  ;;  %v4449_v52 = vld [vmem:[%s4914_s27 + $0x8] sm:$0xff] }
  0x9a   :  { %v70_v4 = vpop.xlane.xlu0 %69 }
  0x9b   :  { %v75_v5 = vmul.f32 0.03125, %v70_v4 }
  0x9d   :  { %v77_v6 = vsub.f32 %v63_v0, %v75_v5 }
  0x9e   :  { %v73_v7 = vpop.xlane.xlu0 %72 }
  0x9f   :  { %v76_v8 = vmul.f32 0.03125, %v73_v7  ;;  %v79_v9 = vmul.f32 %v77_v6, %v77_v6 }
  0xa1   :  { %v78_v10 = vsub.f32 %v64_v1, %v76_v8  ;;  %v81_v11 = vsel %vm67_vm0, %v79_v9, 0.0 }
  0xa2   :  { %82 = vadd.xlane.f32.xlu1 %v81_v11 }
  0xa3   :  { %v80_v12 = vmul.f32 %v78_v10, %v78_v10 }
  0xa5   :  { %v84_v13 = vsel %vm67_vm0, %v80_v12, 0.0 }
  0xa6   :  { %85 = vadd.xlane.f32.xlu1 %v84_v13 }
 0x12f   :  { %v83_v20 = vpop.xlane.xlu1 %82 }
 0x130   :  { %v87_v21 = vmul.f32 0.03125, %v83_v20 }
 0x132   :  { %v89_v22 = vadd.f32 1e-12, %v87_v21 }
 0x133   :  { %v86_v23 = vpop.xlane.xlu1 %85 }
 0x134   :  { %4108 = vrsqrt.f32 %v89_v22  ;;  %v88_v24 = vmul.f32 0.03125, %v86_v23 }
 0x136   :  { %v90_v25 = vadd.f32 1e-12, %v88_v24 }
 0x138   :  { %4110 = vrsqrt.f32 %v90_v25 }
 0x13e   :  { %v4109_v26 = vpop.eup %4108 }
 0x13f   :  { %v93_v28 = vmul.f32 %v4109_v26, %v77_v6 }
 0x141   :  { %v101_v30 = vmul.f32 %v3342_v27, %v93_v28 }
 0x142   :  { %v4111_v31 = vpop.eup %4110 }
 0x143   :  { %v94_v32 = vmul.f32 %v4111_v31, %v78_v10  ;;  %v4398_v33 = vadd.f32 %v3343_v29, %v101_v30 }
 0x145   :  { %v102_v34 = vmul.f32 %v3342_v27, %v94_v32  ;;  %3611 = vmatprep.mubr.msk.f32.mxu0 %vm67_vm0, %v4398_v33 }
 0x147   :  { %v4402_v35 = vadd.f32 %v3343_v29, %v102_v34 }
 0x149   :  { %3612 = vmatmul.mubr.msk.f32.vlgmr.msra.gmra.mrb[0].mxu0 %vm67_vm0, %v4402_v35 }
 0x21c   :  { %v3613_v37 = vpop.f32.mrb[0].mxu0 }
 0x21d   :  { %v4409_v38 = vadd.f32 %v3613_v37, %v3344_v36  ;;  %v196_v39 = vpop.f32.mrb[1].mxu0 }
 0x21e   :  { %v4411_v40 = vadd.f32 %v3344_v36, %v196_v39 }
 0x220   :  { %3618 = vmatprep.mubr.msk.f32.mxu1 %vm215_vm1, %v4411_v40  ;;  %v4417_v41 = vpack.i.bf16 %v4409_v38, %v4411_v40 }
 0x222   :  { %4029 = vrot.lane.b32.xlu0 %v4417_v41, %s4252_s2 }
 0x226   :  { %4039 = vrot.lane.b32.xlu0 %v4417_v41, %s4253_s23 }
 0x22a   :  { %413 = vrot.lane.b32.xlu0 %v4411_v40, %s4254_s24 }
 0x22e   :  { %415 = vrot.lane.b32.xlu0 %v4409_v38, %s4254_s24 }
 0x232   :  { %779 = vrot.lane.b32.xlu0 %v4411_v40, %s4903_s25 }
 0x294   :  { %v4030_v42 = vpop.permute.xlu0 %4029 }
 0x295   :  { %v4032_v43 = vunpack.i.h.bf16 %v4030_v42  ;;  %v4031_v44 = vunpack.i.l.bf16 %v4030_v42 }
 0x297   :  { %v3856_v46 = vpack.c.bf16 %v4032_v43, %v4031_v44 }
 0x298   :  { %v4040_v5 = vpop.permute.xlu0 %4039 }
 0x299   :  { %3858 = vmatprep.subr.msk.bf16.mxu1 %vm4431_vm2, %v3856_v46  ;;  %v4042_v7 = vunpack.i.h.bf16 %v4040_v5  ;;  %v4041_v8 = vunpack.i.l.bf16 %v4040_v5 }
 0x29a   :  { %3861 = vmatpush3.bf16.xpose.msk.msra.mxu1 %vm4431_vm2, %v3856_v46 }
 0x29b   :  { %v3866_v12 = vpack.c.bf16 %v4042_v7, %v4041_v8 }
 0x29c   :  { %v414_v18 = vpop.permute.xlu0 %413 }
 0x2a0   :  { %v416_v22 = vpop.permute.xlu0 %415 }
 0x2a1   :  { %3619 = vmatmul.mubr.msk.f32.vlgmr.msra.gmra.mrb[0].mxu1 %vm215_vm1, %v4409_v38 }
 0x2a4   :  { %v780_v23 = vpop.permute.xlu0 %779 }
 0x374   :  { %v3620_v47 = vpop.f32.mrb[0].mxu1 }
 0x375   :  { %v290_v48 = vpop.f32.mrb[1].mxu1  ;;  %v300_v50 = vmul.f32 0.35355338, %v3620_v47 }
 0x376   :  { %v299_v51 = vmul.f32 0.35355338, %v290_v48 }
 0x377   :  { %v302_v55 = vadd.f32 %v300_v50, %v4449_v52 }
 0x378   :  { %v301_v53 = vadd.f32 %v299_v51, %v4444_v49 }
 0x379   :  { %v307_v56 = vsel %vm303_vm3, %v302_v55, -inf }
 0x37a   :  { %v304_v54 = vsel %vm303_vm3, %v301_v53, -inf }
 0x37b   :  { %305 = vmax.xlane.f32.xlu1 %v304_v54 }
 0x37f   :  { %308 = vmax.xlane.f32.xlu1 %v307_v56 }
 0x408   :  { %v306_v57 = vpop.xlane.xlu1 %305 }
 0x409   :  { %v310_v58 = vsub.f32 %v301_v53, %v306_v57 }
 0x40b   :  { %v312_v61 = vmul.f32 1.442695, %v310_v58 }
 0x40c   :  { %v309_v59 = vpop.xlane.xlu1 %308 }
 0x40d   :  { %v311_v60 = vsub.f32 %v302_v55, %v309_v59 }
 0x40f   :  { %v314_v62 = vmul.f32 1.442695, %v311_v60 }
 0x411   :  { %4112 = vpow2.f32 %v314_v62 }
 0x412   :  { %4114 = vpow2.f32 %v312_v61 }
 0x41b   :  { %v4113_v63 = vpop.eup %4112 }
 0x41c   :  { %v319_v0 = vsel %vm303_vm3, %v4113_v63, 0.0  ;;  %v4115_v1 = vpop.eup %4114 }
 0x41d   :  { %320 = vadd.xlane.f32.xlu1 %v319_v0  ;;  %v316_v2 = vsel %vm303_vm3, %v4115_v1, 0.0 }
 0x421   :  { %317 = vadd.xlane.f32.xlu1 %v316_v2 }
 0x432   :  { %4034 = vrot.lane.b32.xlu1 %v4417_v41, %s4902_s0  ;;  %s4920_s0 = smov 48  }
 0x436   :  { %4044 = vrot.lane.b32.xlu1 %v4417_v41, %s4257_s30 }
 0x43a   :  { %781 = vrot.lane.b32.xlu1 %v4409_v38, %s4903_s25 }
 0x4aa   :  { %v321_v3 = vpop.xlane.xlu1 %320 }
 0x4ab   :  { %4116 = vrcp.f32 %v321_v3 }
 0x4ae   :  { %v318_v4 = vpop.xlane.xlu1 %317 }
 0x4af   :  { %4118 = vrcp.f32 %v318_v4 }
 0x4b2   :  { %v4035_v6 = vpop.permute.xlu1 %4034 }
 0x4b3   :  { %v4037_v9 = vunpack.i.h.bf16 %v4035_v6  ;;  %v4036_v10 = vunpack.i.l.bf16 %v4035_v6 }
 0x4b5   :  { %v3862_v11 = vpack.c.bf16 %v4037_v9, %v4036_v10  ;;  %v4117_v13 = vpop.eup %4116 }
 0x4b6   :  { %v4045_v15 = vpop.permute.xlu1 %4044  ;;  %v325_v17 = vmul.f32 %v4117_v13, %v4113_v63 }
 0x4b7   :  { %3863 = vmatprep.subr.bf16.mxu1 %v3862_v11  ;;  %v4047_v19 = vunpack.i.h.bf16 %v4045_v15  ;;  %v4046_v20 = vunpack.i.l.bf16 %v4045_v15 }
 0x4b8   :  { %3865 = vmatpush3.bf16.msra.mxu1 %v3862_v11 }
 0x4b9   :  { %v4119_v14 = vpop.eup %4118  ;;  %3868 = vmatprep.subr.msk.bf16.mxu1 %vm4431_vm2, %v3866_v12  ;;  %v3876_v21 = vpack.c.bf16 %v4047_v19, %v4046_v20 }
 0x4ba   :  { %v324_v16 = vmul.f32 %v4119_v14, %v4115_v1  ;;  %v782_v24 = vpop.permute.xlu1 %781 }
 0x4bc   :  { %3625 = vmatprep.mubr.msk.f32.mxu1 %vm303_vm3, %v324_v16 }
 0x4bd   :  { %3626 = vmatmul.mubr.msk.f32.vlgmr.msra.gmra.mrb[2].mxu1 %vm303_vm3, %v325_v17 }
 0x4be   :  { %3632 = vmatprep.mubr.msk.f32.mxu1 %vm215_vm1, %v414_v18 }
 0x4c1   :  { %3871 = vmatpush3.bf16.xpose.msk.msra.mxu1 %vm4431_vm2, %v3866_v12 }
 0x4c2   :  { %3878 = vmatprep.subr.msk.bf16.mxu1 %vm4431_vm2, %v3876_v21 }
 0x4c8   :  { %3633 = vmatmul.mubr.msk.f32.vlgmr.msra.gmra.mrb[4].mxu1 %vm215_vm1, %v416_v22 }
 0x4c9   :  { %3881 = vmatpush3.bf16.xpose.msk.msra.mxu1 %vm4431_vm2, %v3876_v21  ;;  %3656 = vmatprep.mubr.msk.f32.mxu1 %vm215_vm1, %v780_v23 }
 0x4d0   :  { %3657 = vmatmul.mubr.msk.f32.vlgmr.msra.gmra.mrb[6].mxu1 %vm215_vm1, %v782_v24 }
 0x590   :  { %v4477_v25 = vpop.f32.mrb[2].mxu1 }
 0x591   :  { %v4479_v26 = vpop.f32.mrb[3].mxu1 }
 0x59b   :  { %v3634_v27 = vpop.f32.mrb[4].mxu1 }
 0x59c   :  { %v505_v28 = vmul.f32 0.35355338, %v3634_v27  ;;  %v495_v29 = vpop.f32.mrb[5].mxu1 }
 0x59d   :  { %v504_v30 = vmul.f32 0.35355338, %v495_v29 }
 0x59e   :  { %v507_v31 = vadd.f32 %v505_v28, %v4449_v52 }
 0x59f   :  { %v506_v32 = vadd.f32 %v504_v30, %v4444_v49 }
 0x5a0   :  { %v511_v34 = vsel %vm303_vm3, %v507_v31, -inf }
 0x5a1   :  { %512 = vmax.xlane.f32.xlu1 %v511_v34  ;;  %v508_v36 = vsel %vm303_vm3, %v506_v32, -inf }
 0x5a2   :  { %509 = vmax.xlane.f32.xlu0 %v508_v36 }
 0x5a3   :  { %v3658_v37 = vpop.f32.mrb[6].mxu1 }
 0x5a4   :  { %v861_v39 = vpop.f32.mrb[7].mxu1  ;;  %v871_v42 = vmul.f32 0.35355338, %v3658_v37 }
 0x5a5   :  { %v870_v1 = vmul.f32 0.35355338, %v861_v39 }
 0x5a6   :  { %v873_v43 = vadd.f32 %v871_v42, %v4449_v52 }
 0x5a7   :  { %v872_v2 = vadd.f32 %v870_v1, %v4444_v49 }
 0x5a8   :  { %v877_v44 = vsel %vm303_vm3, %v873_v43, -inf }
 0x5a9   :  { %v874_v3 = vsel %vm303_vm3, %v872_v2, -inf }
 0x5b2   :  { %4054 = vrot.lane.b32.xlu1 %v4417_v41, %s4901_s20 }
 0x5b6   :  { %1066 = vrot.lane.b32.xlu1 %v4411_v40, %s4899_s21 }
 0x5ba   :  { %1068 = vrot.lane.b32.xlu1 %v4409_v38, %s4899_s21 }
 0x5de   :  { %878 = vmax.xlane.f32.xlu1 %v877_v44 }
 0x62e   :  { %v513_v46 = vpop.xlane.xlu1 %512 }
 0x62f   :  { %v515_v47 = vsub.f32 %v507_v31, %v513_v46  ;;  %v510_v48 = vpop.xlane.xlu0 %509  ;;  %v206_v31 = vld [vmem:[%s4880_s6 + $0x8] sm:$0xff] }
 0x630   :  { %v514_v50 = vsub.f32 %v506_v32, %v510_v48  ;;  %v205_v32 = vld [vmem:[%s4880_s6] sm:$0xff] }
 0x631   :  { %v518_v51 = vmul.f32 1.442695, %v515_v47 }
 0x632   :  { %v516_v53 = vmul.f32 1.442695, %v514_v50  ;;  %v4055_v54 = vpop.permute.xlu1 %4054 }
 0x633   :  { %4120 = vpow2.f32 %v518_v51  ;;  %v4057_v55 = vunpack.i.h.bf16 %v4055_v54  ;;  %v4056_v56 = vunpack.i.l.bf16 %v4055_v54 }
 0x634   :  { %4122 = vpow2.f32 %v516_v53 }
 0x635   :  { %v3886_v40 = vpack.c.bf16 %v4057_v55, %v4056_v56 }
 0x636   :  { %v1067_v57 = vpop.permute.xlu1 %1066 }
 0x637   :  { %3888 = vmatprep.subr.msk.bf16.mxu1 %vm4431_vm2, %v3886_v40  ;;  %3675 = vmatprep.mubr.msk.f32.mxu1 %vm215_vm1, %v1067_v57 }
 0x638   :  { %3891 = vmatpush3.bf16.xpose.msk.msra.mxu1 %vm4431_vm2, %v3886_v40 }
 0x63a   :  { %v1069_v58 = vpop.permute.xlu1 %1068 }
 0x63d   :  { %v4121_v38 = vpop.eup %4120 }
 0x63e   :  { %v523_v59 = vsel %vm303_vm3, %v4121_v38, 0.0  ;;  %v4123_v60 = vpop.eup %4122 }
 0x63f   :  { %3676 = vmatmul.mubr.msk.f32.vlgmr.msra.gmra.mrb[8].mxu1 %vm215_vm1, %v1069_v58  ;;  %524 = vadd.xlane.f32.xlu0 %v523_v59  ;;  %v520_v61 = vsel %vm303_vm3, %v4123_v60, 0.0 }
 0x643   :  { %521 = vadd.xlane.f32.xlu0 %v520_v61 }
 0x659   :  { %4049 = vrot.lane.b32.xlu0 %v4417_v41, %s4898_s1 }
 0x66b   :  { %v879_v62 = vpop.xlane.xlu1 %878 }
 0x66c   :  { %v881_v63 = vsub.f32 %v873_v43, %v879_v62 }
 0x66e   :  { %v884_v0 = vmul.f32 1.442695, %v881_v63 }
 0x670   :  { %4124 = vpow2.f32 %v884_v0 }
 0x678   :  { %875 = vmax.xlane.f32.xlu0 %v874_v3 }
 0x67a   :  { %v4505_v4 = vpop.eup %4124 }
 0x67b   :  { %v889_v5 = vsel %vm303_vm3, %v4505_v4, 0.0 }
 0x67c   :  { %890 = vadd.xlane.f32.xlu0 %v889_v5 }
 0x6cc   :  { %v525_v6 = vpop.xlane.xlu0 %524 }
 0x6cd   :  { %4126 = vrcp.f32 %v525_v6  ;;  %v208_v6 = vld [vmem:[%s4880_s6 + $0x18] sm:$0xff] }
 0x6d0   :  { %v522_v7 = vpop.xlane.xlu0 %521 }
 0x6d1   :  { %4128 = vrcp.f32 %v522_v7 }
 0x6d4   :  { %v4050_v8 = vpop.permute.xlu0 %4049 }
 0x6d5   :  { %v4052_v9 = vunpack.i.h.bf16 %v4050_v8  ;;  %v4051_v10 = vunpack.i.l.bf16 %v4050_v8 }
 0x6d7   :  { %v3872_v11 = vpack.c.bf16 %v4052_v9, %v4051_v10  ;;  %v4127_v12 = vpop.eup %4126  ;;  %v3379_v10 = vld [vmem:[%s4881_s7] ss:$0 sm:$0xff] }
 0x6d8   :  { %v529_v15 = vmul.f32 %v4127_v12, %v4121_v38 }
 0x6d9   :  { %3873 = vmatprep.subr.bf16.mxu0 %v3872_v11 }
 0x6da   :  { %3875 = vmatpush3.bf16.msra.mxu0 %v3872_v11 }
 0x6db   :  { %v4129_v13 = vpop.eup %4128  ;;  %3642 = vmatprep.subr.mxu0 %v206_v31 }
 0x6dc   :  { %v528_v14 = vmul.f32 %v4129_v13, %v4123_v60 }
 0x6de   :  { %3639 = vmatprep.mubr.msk.f32.mxu0 %vm303_vm3, %v528_v14 }
 0x6df   :  { %3640 = vmatmul.mubr.msk.f32.vlgmr.msra.gmra.mrb[2].mxu0 %vm303_vm3, %v529_v15 }
 0x6e0   :  { %3643 = vmatpush3.msra.mxu0 %v206_v31 }
 0x6e1   :  { %3647 = vmatprep.subr.mxu0 %v205_v32 }
 0x705   :  { %v876_v16 = vpop.xlane.xlu0 %875 }
 0x706   :  { %v880_v17 = vsub.f32 %v872_v2, %v876_v16 }
 0x708   :  { %v882_v18 = vmul.f32 1.442695, %v880_v17 }
 0x709   :  { %v891_v34 = vpop.xlane.xlu0 %890 }
 0x70a   :  { %4130 = vpow2.f32 %v882_v18 }
 0x712   :  { %v3677_v19 = vpop.f32.mrb[8].mxu1 }
 0x713   :  { %v1148_v20 = vpop.f32.mrb[9].mxu1  ;;  %v1158_v22 = vmul.f32 0.35355338, %v3677_v19 }
 0x714   :  { %v4131_v21 = vpop.eup %4130  ;;  %v1157_v23 = vmul.f32 0.35355338, %v1148_v20 }
 0x715   :  { %v886_v24 = vsel %vm303_vm3, %v4131_v21, 0.0  ;;  %v1160_v29 = vadd.f32 %v1158_v22, %v4449_v52 }
 0x716   :  { %887 = vadd.xlane.f32.xlu0 %v886_v24  ;;  %v1159_v27 = vadd.f32 %v1157_v23, %v4444_v49 }
 0x717   :  { %v1164_v30 = vsel %vm303_vm3, %v1160_v29, -inf }
 0x718   :  { %v1161_v28 = vsel %vm303_vm3, %v1159_v27, -inf }
 0x719   :  { %1162 = vmax.xlane.f32.xlu1 %v1161_v28 }
 0x71d   :  { %1165 = vmax.xlane.f32.xlu1 %v1164_v30  ;;  %v1409_v30 = vld [vmem:[%s4884_s10 + $0x8] sm:$0xff] }
 0x72c   :  { %4059 = vrot.lane.b32.xlu0 %v4417_v41, %s4897_s22 }
 0x7a3   :  { %v888_v37 = vpop.xlane.xlu0 %887 }
 0x7a4   :  { %4132 = vrcp.f32 %v888_v37 }
 0x7a6   :  { %v1163_v36 = vpop.xlane.xlu1 %1162 }
 0x7a7   :  { %v1167_v39 = vsub.f32 %v1159_v27, %v1163_v36  ;;  %v4060_v47 = vpop.permute.xlu0 %4059 }
 0x7a8   :  { %v4062_v48 = vunpack.i.h.bf16 %v4060_v47  ;;  %v4061_v50 = vunpack.i.l.bf16 %v4060_v47 }
 0x7a9   :  { %v1169_v44 = vmul.f32 1.442695, %v1167_v39 }
 0x7aa   :  { %v1166_v42 = vpop.xlane.xlu1 %1165  ;;  %v3882_v54 = vpack.c.bf16 %v4062_v48, %v4061_v50  ;;  %v3380_v48 = vld [vmem:[%s4882_s8] ss:$0 sm:$0xff] }
 0x7ab   :  { %v1168_v43 = vsub.f32 %v1160_v29, %v1166_v42 }
 0x7ad   :  { %v1171_v46 = vmul.f32 1.442695, %v1168_v43 }
 0x7ae   :  { %v4133_v55 = vpop.eup %4132 }
 0x7af   :  { %4134 = vpow2.f32 %v1171_v46  ;;  %v894_v58 = vmul.f32 %v4133_v55, %v4131_v21 }
 0x7b0   :  { %4136 = vpow2.f32 %v1169_v44 }
 0x7b1   :  { %4138 = vrcp.f32 %v891_v34  ;;  %v1411_v34 = vld [vmem:[%s4884_s10 + $0x18] sm:$0xff] }
 0x7b2   :  { %v3641_v51 = vpop.f32.mrb[2].mxu0 }
 0x7b3   :  { %v608_v53 = vpop.f32.mrb[3].mxu0 }
 0x7b4   :  { %3644 = vmatprep.mubr.msk.f32.mxu0 %vm215_vm1, %v608_v53 }
 0x7b5   :  { %3645 = vmatmul.mubr.msk.f32.vlgmr.msra.gmra.mrb[4].mxu0 %vm215_vm1, %v3641_v51  ;;  %v3381_v51 = vld [vmem:[%s4883_s9] ss:$0 sm:$0xff] }
 0x7b6   :  { %3648 = vmatpush3.msra.mxu0 %v205_v32  ;;  %3649 = vmatprep.mubr.msk.f32.mxu0 %vm215_vm1, %v4479_v26  ;;  %v207_v26 = vld [vmem:[%s4880_s6 + $0x10] sm:$0xff] }
 0x7b7   :  { %3883 = vmatprep.subr.bf16.mxu0 %v3882_v54  ;;  %v1410_v32 = vld [vmem:[%s4884_s10 + $0x10] sm:$0xff] }
 0x7b8   :  { %v3900_v36 = vpack.c.bf16 %v1411_v34, %v1410_v32 }
 0x7b9   :  { %v4135_v56 = vpop.eup %4134 }
 0x7ba   :  { %v1176_v40 = vsel %vm303_vm3, %v4135_v56, 0.0  ;;  %v4137_v57 = vpop.eup %4136 }
 0x7bb   :  { %1177 = vadd.xlane.f32.xlu1 %v1176_v40  ;;  %v4139_v38 = vpop.eup %4138  ;;  %v1173_v59 = vsel %vm303_vm3, %v4137_v57, 0.0 }
 0x7bc   :  { %v895_v60 = vmul.f32 %v4139_v38, %v4505_v4  ;;  %v1518_v38 = vld [vmem:[%s4886_s12] sm:$0xff] }
 0x7bd   :  { %3650 = vmatmul.mubr.msk.f32.vlgmr.msra.gmra.mrb[4].mxu0 %vm215_vm1, %v4477_v25 }
 0x7be   :  { %3885 = vmatpush3.bf16.msra.mxu0 %v3882_v54  ;;  %3663 = vmatprep.mubr.msk.f32.mxu0 %vm303_vm3, %v894_v58  ;;  %v1519_v58 = vld [vmem:[%s4886_s12 + $0x8] sm:$0xff] }
 0x7bf   :  { %1174 = vadd.xlane.f32.xlu1 %v1173_v59  ;;  %3666 = vmatprep.subr.mxu0 %v207_v26  ;;  %v3904_v59 = vpack.c.bf16 %v1519_v58, %v1518_v38 }
 0x7c1   :  { %3664 = vmatmul.mubr.msk.f32.vlgmr.msra.gmra.mrb[6].mxu0 %vm303_vm3, %v895_v60  ;;  %v1520_v60 = vld [vmem:[%s4886_s12 + $0x10] sm:$0xff] }
 0x7c2   :  { %3667 = vmatpush3.msra.mxu0 %v207_v26  ;;  %v1521_v26 = vld [vmem:[%s4886_s12 + $0x18] sm:$0xff] }
 0x7d0   :  { %4064 = vrot.lane.b32.xlu1 %v4417_v41, %s4896_s3 }
 0x848   :  { %v1178_v25 = vpop.xlane.xlu1 %1177 }
 0x84c   :  { %v1175_v61 = vpop.xlane.xlu1 %1174 }
 0x84d   :  { %4140 = vrcp.f32 %v1175_v61  ;;  %v1522_v61 = vld [vmem:[%s4886_s12 + $0x20] sm:$0xff] }
 0x84e   :  { %4142 = vrcp.f32 %v1178_v25  ;;  %v3908_v25 = vpack.c.bf16 %v1521_v26, %v1520_v60 }
 0x850   :  { %v4065_v62 = vpop.permute.xlu1 %4064 }
 0x851   :  { %v4067_v63 = vunpack.i.h.bf16 %v4065_v62  ;;  %v4066_v0 = vunpack.i.l.bf16 %v4065_v62  ;;  %v1523_v62 = vld [vmem:[%s4886_s12 + $0x28] sm:$0xff] }
 0x853   :  { %v3892_v1 = vpack.c.bf16 %v4067_v63, %v4066_v0  ;;  %v3912_v63 = vpack.c.bf16 %v1523_v62, %v1522_v61  ;;  %v1524_v0 = vld [vmem:[%s4886_s12 + $0x30] sm:$0xff]  ;;  %v3388_v61 = vld [vmem:[%s4888_s14] ss:$0 sm:$0xff] }
 0x855   :  { %3893 = vmatprep.subr.bf16.mxu0 %v3892_v1 }
 0x857   :  { %v4141_v2 = vpop.eup %4140 }
 0x858   :  { %v4143_v5 = vpop.eup %4142  ;;  %v1181_v41 = vmul.f32 %v4141_v2, %v4137_v57 }
 0x859   :  { %v1182_v7 = vmul.f32 %v4143_v5, %v4135_v56 }
 0x894   :  { %v3665_v3 = vpop.f32.mrb[6].mxu0 }
 0x895   :  { %v974_v4 = vpop.f32.mrb[7].mxu0 }
 0x896   :  { %3668 = vmatprep.mubr.msk.f32.mxu0 %vm215_vm1, %v974_v4 }
 0x897   :  { %3669 = vmatmul.mubr.msk.f32.vlgmr.msra.gmra.mrb[4].mxu0 %vm215_vm1, %v3665_v3  ;;  %v3382_v3 = vld [vmem:[%s4885_s11] ss:$0 sm:$0xff] }
 0x898   :  { %3895 = vmatpush3.bf16.msra.mxu0 %v3892_v1  ;;  %3682 = vmatprep.mubr.msk.f32.mxu0 %vm303_vm3, %v1181_v41  ;;  %v1525_v1 = vld [vmem:[%s4886_s12 + $0x38] sm:$0xff] }
 0x899   :  { %3685 = vmatprep.subr.mxu0 %v208_v6  ;;  %v3916_v2 = vpack.c.bf16 %v1525_v1, %v1524_v0 }
 0x89b   :  { %3683 = vmatmul.mubr.msk.f32.vlgmr.msra.gmra.mrb[8].mxu0 %vm303_vm3, %v1182_v7 }
 0x89c   :  { %3686 = vmatpush3.msra.mxu0 %v208_v6 }
 0x89d   :  { %3905 = vmatprep.subr.bf16.mxu0 %v3904_v59 }
 0x96e   :  { %v3684_v8 = vpop.f32.mrb[8].mxu0 }
 0x96f   :  { %v1261_v9 = vpop.f32.mrb[9].mxu0 }
 0x970   :  { %3687 = vmatprep.mubr.msk.f32.mxu0 %vm215_vm1, %v1261_v9 }
 0x971   :  { %3688 = vmatmul.mubr.msk.f32.vlgmr.msra.gmra.mrb[4].mxu0 %vm215_vm1, %v3684_v8 }
 0x972   :  { %3907 = vmatpush3.bf16.msra.mxu0 %v3904_v59 }
 0x973   :  { %3909 = vmatprep.subr.bf16.mxu0 %v3908_v25 }
 0x976   :  { %3911 = vmatpush3.bf16.msra.mxu0 %v3908_v25 }
 0x977   :  { %3913 = vmatprep.subr.bf16.mxu0 %v3912_v63 }
 0x97a   :  { %3915 = vmatpush3.bf16.msra.mxu0 %v3912_v63  ;;  %v3389_v63 = vld [vmem:[%s4889_s15] ss:$0 sm:$0xff] }
 0x97b   :  { %3917 = vmatprep.subr.bf16.mxu0 %v3916_v2 }
 0x97e   :  { %3919 = vmatpush3.bf16.msra.mxu0 %v3916_v2 }
 0xa44   :  { %v3689_v11 = vpop.f32.mrb[4].mxu0 }
 0xa45   :  { %v1361_v12 = vadd.f32 %v3689_v11, %v3379_v10  ;;  %v1342_v13 = vpop.f32.mrb[5].mxu0 }
 0xa46   :  { %v1360_v14 = vadd.f32 %v3379_v10, %v1342_v13 }
 0xa47   :  { %v1363_v15 = vadd.f32 %v1361_v12, %v4402_v35 }
 0xa48   :  { %v1362_v16 = vadd.f32 %v1360_v14, %v4398_v33  ;;  %v1408_v33 = vld [vmem:[%s4884_s10] sm:$0xff] }
 0xa49   :  { %v1369_v17 = vsel %vm67_vm0, %v1363_v15, 0.0  ;;  %v3896_v31 = vpack.c.bf16 %v1409_v30, %v1408_v33 }
 0xa4a   :  { %1370 = vadd.xlane.f32.xlu1 %v1369_v17  ;;  %v1366_v18 = vsel %vm67_vm0, %v1362_v16, 0.0 }
 0xa4b   :  { %1367 = vadd.xlane.f32.xlu0 %v1366_v18  ;;  %3897 = vmatprep.subr.bf16.mxu1 %v3896_v31 }
 0xa4c   :  { %3899 = vmatpush3.bf16.msra.mxu1 %v3896_v31 }
 0xa4d   :  { %3901 = vmatprep.subr.bf16.mxu1 %v3900_v36 }
 0xa50   :  { %3903 = vmatpush3.bf16.msra.mxu1 %v3900_v36 }
 0xad7   :  { %v1371_v19 = vpop.xlane.xlu1 %1370 }
 0xad8   :  { %v1373_v20 = vmul.f32 0.03125, %v1371_v19  ;;  %v1368_v21 = vpop.xlane.xlu0 %1367 }
 0xad9   :  { %v1372_v22 = vmul.f32 0.03125, %v1368_v21 }
 0xada   :  { %v1375_v23 = vsub.f32 %v1363_v15, %v1373_v20 }
 0xadb   :  { %v1374_v24 = vsub.f32 %v1362_v16, %v1372_v22 }
 0xadc   :  { %v1377_v29 = vmul.f32 %v1375_v23, %v1375_v23 }
 0xadd   :  { %v1376_v27 = vmul.f32 %v1374_v24, %v1374_v24 }
 0xade   :  { %v1381_v35 = vsel %vm67_vm0, %v1377_v29, 0.0 }
 0xadf   :  { %v1378_v28 = vsel %vm67_vm0, %v1376_v27, 0.0  ;;  %v3385_v27 = vld [vmem:[%s4887_s13] ss:$0 sm:$0xff] }
 0xae0   :  { %1379 = vadd.xlane.f32.xlu0 %v1378_v28 }
 0xae4   :  { %1382 = vadd.xlane.f32.xlu0 %v1381_v35 }
 0xb6d   :  { %v1380_v37 = vpop.xlane.xlu0 %1379 }
 0xb6e   :  { %v1384_v39 = vmul.f32 0.03125, %v1380_v37 }
 0xb70   :  { %v1386_v42 = vadd.f32 1e-12, %v1384_v39 }
 0xb71   :  { %v1383_v43 = vpop.xlane.xlu0 %1382 }
 0xb72   :  { %4144 = vrsqrt.f32 %v1386_v42  ;;  %v1385_v44 = vmul.f32 0.03125, %v1383_v43 }
 0xb74   :  { %v1387_v46 = vadd.f32 1e-12, %v1385_v44 }
 0xb76   :  { %4146 = vrsqrt.f32 %v1387_v46 }
 0xb7c   :  { %v4145_v47 = vpop.eup %4144 }
 0xb7d   :  { %v1390_v50 = vmul.f32 %v4145_v47, %v1374_v24 }
 0xb7f   :  { %v1398_v53 = vmul.f32 %v3380_v48, %v1390_v50 }
 0xb80   :  { %v4147_v54 = vpop.eup %4146 }
 0xb81   :  { %v1391_v55 = vmul.f32 %v4147_v54, %v1375_v23  ;;  %v1406_v56 = vadd.f32 %v3381_v51, %v1398_v53  ;;  %v3391_v53 = vld [vmem:[%s4878_s4 + $0x28] sm:$0xff] }
 0xb83   :  { %v1399_v40 = vmul.f32 %v3380_v48, %v1391_v55  ;;  %3698 = vmatprep.mubr.msk.f32.mxu1 %vm67_vm0, %v1406_v56  ;;  %v3392_v55 = vld [vmem:[%s4878_s4 + $0x30] sm:$0xff] }
 0xb85   :  { %v1407_v57 = vadd.f32 %v3381_v51, %v1399_v40  ;;  %v3390_v51 = vld [vmem:[%s4878_s4 + $0x20] sm:$0xff] }
 0xb86   :  { %v3920_v54 = vpack.c.bf16 %v3391_v53, %v3390_v51 }
 0xb87   :  { %3699 = vmatmul.mubr.msk.f32.vlgmr.msra.gmra.mrb[10].mxu1 %vm67_vm0, %v1407_v57 }
 0xb88   :  { %3921 = vmatprep.subr.bf16.mxu1 %v3920_v54 }
 0xb89   :  { %3923 = vmatpush3.bf16.msra.mxu1 %v3920_v54 }
 0xc5a   :  { %v3700_v4 = vpop.f32.mrb[10].mxu1 }
 0xc5b   :  { %v1497_v5 = vadd.f32 %v3700_v4, %v3382_v3  ;;  %v1491_v41 = vpop.f32.mrb[11].mxu1 }
 0xc5c   :  { %v1492_v6 = vadd.f32 %v3382_v3, %v1491_v41  ;;  %v3395_v41 = vld [vmem:[%s4879_s5 + $0x1] ss:$0 sm:$0xff]  ;;  %s4915_s5 = smov 112  }
 0xc5d   :  { %v1503_v7 = vmul.f32 0.044715, %v1497_v5  ;;  %v1501_v22 = vmul.f32 0.5, %v1497_v5 }
 0xc5e   :  { %v1502_v8 = vmul.f32 0.044715, %v1492_v6  ;;  %v1500_v20 = vmul.f32 0.5, %v1492_v6 }
 0xc5f   :  { %v1505_v9 = vmul.f32 %v1503_v7, %v1497_v5 }
 0xc60   :  { %v1504_v10 = vmul.f32 %v1502_v8, %v1492_v6 }
 0xc61   :  { %v1507_v11 = vmul.f32 %v1505_v9, %v1497_v5 }
 0xc62   :  { %v1506_v12 = vmul.f32 %v1504_v10, %v1492_v6 }
 0xc63   :  { %v1509_v13 = vadd.f32 %v1507_v11, %v1497_v5 }
 0xc64   :  { %v1508_v14 = vadd.f32 %v1506_v12, %v1492_v6 }
 0xc65   :  { %v1511_v15 = vmul.f32 0.7978846, %v1509_v13 }
 0xc66   :  { %v1510_v16 = vmul.f32 0.7978846, %v1508_v14 }
 0xc67   :  { %4148 = vtanh.f32 %v1511_v15 }
 0xc68   :  { %4150 = vtanh.f32 %v1510_v16 }
 0xc71   :  { %v4149_v17 = vpop.eup %4148 }
 0xc72   :  { %v4151_v18 = vpop.eup %4150  ;;  %v1515_v19 = vadd.f32 1.0, %v4149_v17 }
 0xc73   :  { %v1514_v21 = vadd.f32 1.0, %v4151_v18 }
 0xc74   :  { %v1517_v24 = vmul.f32 %v1515_v19, %v1501_v22 }
 0xc75   :  { %v1516_v23 = vmul.f32 %v1514_v21, %v1500_v20 }
 0xc77   :  { %3717 = vmatprep.mubr.msk.f32.mxu0 %vm1533_vm4, %v1516_v23 }
 0xc78   :  { %3718 = vmatmul.mubr.msk.f32.vlgmr.msra.gmra.mrb[10].mxu0 %vm1533_vm4, %v1517_v24 }
 0xd4b   :  { %v3719_v28 = vpop.f32.mrb[10].mxu0 }
 0xd4c   :  { %v1606_v29 = vpop.f32.mrb[11].mxu0  ;;  %v1612_v35 = vadd.f32 %v3719_v28, %v3385_v27 }
 0xd4d   :  { %v1607_v33 = vadd.f32 %v3385_v27, %v1606_v29 }
 0xd4e   :  { %v1616_v32 = vadd.f32 %v1612_v35, %v1407_v57 }
 0xd4f   :  { %v1615_v30 = vadd.f32 %v1607_v33, %v1406_v56  ;;  %v3393_v56 = vld [vmem:[%s4878_s4 + $0x38] sm:$0xff] }
 0xd50   :  { %v1622_v34 = vsel %vm67_vm0, %v1616_v32, 0.0  ;;  %v3924_v40 = vpack.c.bf16 %v3393_v56, %v3392_v55 }
 0xd51   :  { %v1619_v31 = vsel %vm67_vm0, %v1615_v30, 0.0 }
 0xd52   :  { %1620 = vadd.xlane.f32.xlu0 %v1619_v31  ;;  %3925 = vmatprep.subr.bf16.mxu1 %v3924_v40 }
 0xd53   :  { %3927 = vmatpush3.bf16.msra.mxu1 %v3924_v40 }
 0xd56   :  { %1623 = vadd.xlane.f32.xlu0 %v1622_v34 }
 0xddf   :  { %v1621_v36 = vpop.xlane.xlu0 %1620 }
 0xde0   :  { %v1625_v37 = vmul.f32 0.03125, %v1621_v36 }
 0xde2   :  { %v1627_v39 = vsub.f32 %v1615_v30, %v1625_v37 }
 0xde3   :  { %v1624_v42 = vpop.xlane.xlu0 %1623 }
 0xde4   :  { %v1626_v43 = vmul.f32 0.03125, %v1624_v42  ;;  %v1629_v44 = vmul.f32 %v1627_v39, %v1627_v39 }
 0xde6   :  { %v1628_v46 = vsub.f32 %v1616_v32, %v1626_v43  ;;  %v1631_v47 = vsel %vm67_vm0, %v1629_v44, 0.0 }
 0xde7   :  { %1632 = vadd.xlane.f32.xlu0 %v1631_v47 }
 0xde8   :  { %v1630_v48 = vmul.f32 %v1628_v46, %v1628_v46 }
 0xdea   :  { %v1634_v50 = vsel %vm67_vm0, %v1630_v48, 0.0 }
 0xdeb   :  { %1635 = vadd.xlane.f32.xlu1 %v1634_v50 }
 0xe74   :  { %v1633_v57 = vpop.xlane.xlu0 %1632 }
 0xe75   :  { %v1637_v38 = vmul.f32 0.03125, %v1633_v57 }
 0xe77   :  { %v1639_v58 = vadd.f32 1e-12, %v1637_v38 }
 0xe78   :  { %v1636_v59 = vpop.xlane.xlu1 %1635 }
 0xe79   :  { %4152 = vrsqrt.f32 %v1639_v58  ;;  %v1638_v60 = vmul.f32 0.03125, %v1636_v59 }
 0xe7b   :  { %v1640_v26 = vadd.f32 1e-12, %v1638_v60 }
 0xe7d   :  { %4154 = vrsqrt.f32 %v1640_v26 }
 0xe83   :  { %v4153_v25 = vpop.eup %4152 }
 0xe84   :  { %v1643_v62 = vmul.f32 %v4153_v25, %v1627_v39 }
 0xe86   :  { %v1651_v0 = vmul.f32 %v3388_v61, %v1643_v62 }
 0xe87   :  { %v4155_v1 = vpop.eup %4154 }
 0xe88   :  { %v1644_v2 = vmul.f32 %v4155_v1, %v1628_v46  ;;  %v4632_v3 = vadd.f32 %v3389_v63, %v1651_v0 }
 0xe8a   :  { %v1652_v4 = vmul.f32 %v3388_v61, %v1644_v2  ;;  %3728 = vmatprep.mubr.msk.f32.mxu1 %vm67_vm0, %v4632_v3 }
 0xe8c   :  { %v4636_v5 = vadd.f32 %v3389_v63, %v1652_v4 }
 0xe8e   :  { %3729 = vmatmul.mubr.msk.f32.vlgmr.msra.gmra.mrb[12].mxu1 %vm67_vm0, %v4636_v5 }
 0xf61   :  { %v3730_v6 = vpop.f32.mrb[12].mxu1 }
 0xf62   :  { %v4643_v7 = vadd.f32 %v3730_v6, %v3395_v41  ;;  %v1746_v8 = vpop.f32.mrb[13].mxu1 }
 0xf63   :  { %v4645_v9 = vadd.f32 %v3395_v41, %v1746_v8 }
 0xf65   :  { %3735 = vmatprep.mubr.msk.f32.mxu1 %vm215_vm1, %v4645_v9  ;;  %v4651_v10 = vpack.i.bf16 %v4643_v7, %v4645_v9 }
 0xf67   :  { %4074 = vrot.lane.b32.xlu1 %v4651_v10, %s4253_s23  ;;  %4069 = vrot.lane.b32.xlu0 %v4651_v10, %s4252_s2  ;;  %s4916_s2 = smov 64   ;;  %s4917_s23 = smov 72  }
 0xf6b   :  { %1962 = vrot.lane.b32.xlu1 %v4645_v9, %s4254_s24  ;;  %4079 = vrot.lane.b32.xlu0 %v4651_v10, %s4257_s30  ;;  %s4919_s30 = smov 56  }
 0xf6f   :  { %1964 = vrot.lane.b32.xlu1 %v4643_v7, %s4254_s24  ;;  %2330 = vrot.lane.b32.xlu0 %v4643_v7, %s4915_s5  ;;  %s4918_s24 = smov 104  }
 0xf73   :  { %2328 = vrot.lane.b32.xlu1 %v4645_v9, %s4915_s5 }
 0xfd9   :  { %v4075_v11 = vpop.permute.xlu1 %4074  ;;  %v4070_v12 = vpop.permute.xlu0 %4069 }
 0xfda   :  { %v4077_v13 = vunpack.i.h.bf16 %v4075_v11  ;;  %v4076_v14 = vunpack.i.l.bf16 %v4075_v11  ;;  %v4072_v15 = vunpack.i.h.bf16 %v4070_v12  ;;  %v4071_v16 = vunpack.i.l.bf16 %v4070_v12 }
 0xfdc   :  { %v3928_v17 = vpack.c.bf16 %v4072_v15, %v4071_v16  ;;  %v3938_v18 = vpack.c.bf16 %v4077_v13, %v4076_v14 }
 0xfdd   :  { %v4080_v19 = vpop.permute.xlu0 %4079  ;;  %v1963_v20 = vpop.permute.xlu1 %1962 }
 0xfde   :  { %3930 = vmatprep.subr.msk.bf16.mxu1 %vm4431_vm2, %v3928_v17  ;;  %v4082_v21 = vunpack.i.h.bf16 %v4080_v19  ;;  %v4081_v22 = vunpack.i.l.bf16 %v4080_v19 }
 0xfdf   :  { %3933 = vmatpush3.bf16.xpose.msk.msra.mxu1 %vm4431_vm2, %v3928_v17 }
 0xfe0   :  { %3940 = vmatprep.subr.msk.bf16.mxu1 %vm4431_vm2, %v3938_v18  ;;  %v3948_v23 = vpack.c.bf16 %v4082_v21, %v4081_v22 }
 0xfe1   :  { %v1965_v24 = vpop.permute.xlu1 %1964  ;;  %v2331_v28 = vpop.permute.xlu0 %2330 }
 0xfe5   :  { %v2329_v27 = vpop.permute.xlu1 %2328 }
 0xfe6   :  { %3736 = vmatmul.mubr.msk.f32.vlgmr.msra.gmra.mrb[14].mxu1 %vm215_vm1, %v4643_v7 }
 0xfe7   :  { %3943 = vmatpush3.bf16.xpose.msk.msra.mxu1 %vm4431_vm2, %v3938_v18  ;;  %3749 = vmatprep.mubr.msk.f32.mxu1 %vm215_vm1, %v1963_v20 }
 0xfe8   :  { %3950 = vmatprep.subr.msk.bf16.mxu1 %vm4431_vm2, %v3948_v23 }
 0xfee   :  { %3750 = vmatmul.mubr.msk.f32.vlgmr.msra.gmra.mrb[16].mxu1 %vm215_vm1, %v1965_v24 }
 0xfef   :  { %3953 = vmatpush3.bf16.xpose.msk.msra.mxu1 %vm4431_vm2, %v3948_v23  ;;  %3773 = vmatprep.mubr.msk.f32.mxu1 %vm215_vm1, %v2329_v27 }
 0xff6   :  { %3774 = vmatmul.mubr.msk.f32.vlgmr.msra.gmra.mrb[18].mxu1 %vm215_vm1, %v2331_v28 }
0x10b9   :  { %v3737_v29 = vpop.f32.mrb[14].mxu1 }
0x10ba   :  { %v1850_v35 = vmul.f32 0.35355338, %v3737_v29  ;;  %v1840_v33 = vpop.f32.mrb[15].mxu1 }
0x10bb   :  { %v1849_v30 = vmul.f32 0.35355338, %v1840_v33 }
0x10bc   :  { %v1852_v31 = vadd.f32 %v1850_v35, %v4449_v52 }
0x10bd   :  { %v1851_v32 = vadd.f32 %v1849_v30, %v4444_v49 }
0x10be   :  { %v1856_v34 = vsel %vm303_vm3, %v1852_v31, -inf }
0x10bf   :  { %1857 = vmax.xlane.f32.xlu0 %v1856_v34  ;;  %v1853_v36 = vsel %vm303_vm3, %v1851_v32, -inf }
0x10c0   :  { %1854 = vmax.xlane.f32.xlu1 %v1853_v36 }
0x10c1   :  { %v3751_v37 = vpop.f32.mrb[16].mxu1 }
0x10c2   :  { %v2044_v39 = vpop.f32.mrb[17].mxu1  ;;  %v2054_v42 = vmul.f32 0.35355338, %v3751_v37 }
0x10c3   :  { %v2053_v43 = vmul.f32 0.35355338, %v2044_v39 }
0x10c4   :  { %v2056_v47 = vadd.f32 %v2054_v42, %v4449_v52 }
0x10c5   :  { %v2055_v44 = vadd.f32 %v2053_v43, %v4444_v49 }
0x10c6   :  { %v2060_v51 = vsel %vm303_vm3, %v2056_v47, -inf }
0x10c7   :  { %v2057_v46 = vsel %vm303_vm3, %v2055_v44, -inf }
0x10c8   :  { %2058 = vmax.xlane.f32.xlu0 %v2057_v46 }
0x10c9   :  { %v3775_v48 = vpop.f32.mrb[18].mxu1 }
0x10ca   :  { %v2410_v50 = vpop.f32.mrb[19].mxu1  ;;  %v2420_v11 = vmul.f32 0.35355338, %v3775_v48 }
0x10cb   :  { %v2419_v6 = vmul.f32 0.35355338, %v2410_v50 }
0x10cc   :  { %2061 = vmax.xlane.f32.xlu0 %v2060_v51  ;;  %v2422_v13 = vadd.f32 %v2420_v11, %v4449_v52 }
0x10cd   :  { %v2421_v8 = vadd.f32 %v2419_v6, %v4444_v49 }
0x10ce   :  { %v2426_v14 = vsel %vm303_vm3, %v2422_v13, -inf }
0x10cf   :  { %v2423_v12 = vsel %vm303_vm3, %v2421_v8, -inf }
0x114c   :  { %v1858_v53 = vpop.xlane.xlu0 %1857 }
0x114d   :  { %v1860_v54 = vsub.f32 %v1852_v31, %v1858_v53  ;;  %v1855_v55 = vpop.xlane.xlu1 %1854 }
0x114e   :  { %v1859_v56 = vsub.f32 %v1851_v32, %v1855_v55  ;;  %v3398_v55 = vld [vmem:[%s4880_s6 + $0x20] sm:$0xff] }
0x114f   :  { %v1863_v40 = vmul.f32 1.442695, %v1860_v54  ;;  %v3399_v54 = vld [vmem:[%s4880_s6 + $0x28] sm:$0xff] }
0x1150   :  { %v1861_v57 = vmul.f32 1.442695, %v1859_v56 }
0x1151   :  { %4156 = vpow2.f32 %v1863_v40 }
0x1152   :  { %4158 = vpow2.f32 %v1861_v57 }
0x1155   :  { %v2059_v38 = vpop.xlane.xlu0 %2058 }
0x1156   :  { %v2063_v58 = vsub.f32 %v2055_v44, %v2059_v38 }
0x1158   :  { %v2065_v59 = vmul.f32 1.442695, %v2063_v58 }
0x1159   :  { %v2062_v60 = vpop.xlane.xlu0 %2061 }
0x115a   :  { %4160 = vpow2.f32 %v2065_v59  ;;  %v2064_v26 = vsub.f32 %v2056_v47, %v2062_v60 }
0x115b   :  { %v4157_v25 = vpop.eup %4156 }
0x115c   :  { %v4159_v61 = vpop.eup %4158  ;;  %v2067_v62 = vmul.f32 1.442695, %v2064_v26  ;;  %v1868_v63 = vsel %vm303_vm3, %v4157_v25, 0.0 }
0x115d   :  { %1869 = vadd.xlane.f32.xlu0 %v1868_v63  ;;  %v1865_v0 = vsel %vm303_vm3, %v4159_v61, 0.0 }
0x115e   :  { %4162 = vpow2.f32 %v2067_v62  ;;  %1866 = vadd.xlane.f32.xlu1 %v1865_v0 }
0x1164   :  { %v4161_v1 = vpop.eup %4160 }
0x1165   :  { %v2069_v2 = vsel %vm303_vm3, %v4161_v1, 0.0 }
0x1166   :  { %2070 = vadd.xlane.f32.xlu1 %v2069_v2 }
0x1168   :  { %v4163_v4 = vpop.eup %4162 }
0x1169   :  { %v2072_v41 = vsel %vm303_vm3, %v4163_v4, 0.0 }
0x116a   :  { %2073 = vadd.xlane.f32.xlu0 %v2072_v41 }
0x1177   :  { %4084 = vrot.lane.b32.xlu1 %v4651_v10, %s4916_s2 }
0x117b   :  { %4094 = vrot.lane.b32.xlu1 %v4651_v10, %s4917_s23 }
0x117f   :  { %2615 = vrot.lane.b32.xlu1 %v4645_v9, %s4918_s24 }
0x1180   :  { %4089 = vrot.lane.b32.xlu0 %v4651_v10, %s4919_s30 }
0x1183   :  { %2617 = vrot.lane.b32.xlu1 %v4643_v7, %s4918_s24 }
0x119f   :  { %2424 = vmax.xlane.f32.xlu0 %v2423_v12  ;;  %v4203_v12 = vld [vmem:[%s4914_s27 + $0x8] sm:$0xff] }
0x11a7   :  { %2427 = vmax.xlane.f32.xlu1 %v2426_v14 }
0x11ea   :  { %v1870_v9 = vpop.xlane.xlu0 %1869 }
0x11eb   :  { %v1867_v15 = vpop.xlane.xlu1 %1866 }
0x11ec   :  { %4164 = vrcp.f32 %v1867_v15 }
0x11ed   :  { %4166 = vrcp.f32 %v1870_v9  ;;  %v3400_v9 = vld [vmem:[%s4880_s6 + $0x30] sm:$0xff] }
0x11f3   :  { %v2071_v16 = vpop.xlane.xlu1 %2070 }
0x11f4   :  { %4168 = vrcp.f32 %v2071_v16 }
0x11f6   :  { %v4165_v17 = vpop.eup %4164 }
0x11f7   :  { %v2074_v7 = vpop.xlane.xlu0 %2073  ;;  %v4085_v18 = vpop.permute.xlu1 %4084  ;;  %v1873_v19 = vmul.f32 %v4165_v17, %v4159_v61 }
0x11f8   :  { %4170 = vrcp.f32 %v2074_v7  ;;  %v4087_v49 = vunpack.i.h.bf16 %v4085_v18  ;;  %v4086_v20 = vunpack.i.l.bf16 %v4085_v18  ;;  %v4167_v52 = vpop.eup %4166 }
0x11f9   :  { %3742 = vmatprep.mubr.msk.f32.mxu0 %vm303_vm3, %v1873_v19  ;;  %v1874_v33 = vmul.f32 %v4167_v52, %v4157_v25 }
0x11fa   :  { %v3934_v21 = vpack.c.bf16 %v4087_v49, %v4086_v20 }
0x11fb   :  { %v4090_v22 = vpop.permute.xlu0 %4089  ;;  %v4095_v23 = vpop.permute.xlu1 %4094 }
0x11fc   :  { %v4092_v24 = vunpack.i.h.bf16 %v4090_v22  ;;  %v4091_v27 = vunpack.i.l.bf16 %v4090_v22  ;;  %v4097_v28 = vunpack.i.h.bf16 %v4095_v23  ;;  %v4096_v29 = vunpack.i.l.bf16 %v4095_v23  ;;  %3935 = vmatprep.subr.bf16.mxu0 %v3934_v21 }
0x11fd   :  { %3937 = vmatpush3.bf16.msra.mxu0 %v3934_v21 }
0x11fe   :  { %v4169_v35 = vpop.eup %4168  ;;  %v3944_v30 = vpack.c.bf16 %v4092_v24, %v4091_v27  ;;  %v3958_v31 = vpack.c.bf16 %v4097_v28, %v4096_v29 }
0x11ff   :  { %v2616_v32 = vpop.permute.xlu1 %2615  ;;  %v2077_v34 = vmul.f32 %v4169_v35, %v4161_v1 }
0x1200   :  { %3743 = vmatmul.mubr.msk.f32.vlgmr.msra.gmra.mrb[12].mxu0 %vm303_vm3, %v1874_v33  ;;  %3945 = vmatprep.subr.bf16.mxu0 %v3944_v30 }
0x1201   :  { %3960 = vmatprep.subr.msk.bf16.mxu1 %vm4431_vm2, %v3958_v31  ;;  %3792 = vmatprep.mubr.msk.f32.mxu1 %vm215_vm1, %v2616_v32 }
0x1202   :  { %v4171_v36 = vpop.eup %4170  ;;  %3947 = vmatpush3.bf16.msra.mxu0 %v3944_v30  ;;  %3756 = vmatprep.mubr.msk.f32.mxu0 %vm303_vm3, %v2077_v34 }
0x1203   :  { %v2078_v37 = vmul.f32 %v4171_v36, %v4163_v4  ;;  %3963 = vmatpush3.bf16.xpose.msk.msra.mxu1 %vm4431_vm2, %v3958_v31  ;;  %v2618_v39 = vpop.permute.xlu1 %2617  ;;  %3759 = vmatprep.subr.mxu0 %v3399_v54  ;;  %v4202_v4 = vld [vmem:[%s4914_s27] sm:$0xff]  ;;  %s4921_s27 = smov 40   ;;  %v3401_v31 = vld [vmem:[%s4880_s6 + $0x38] sm:$0xff] }
0x1205   :  { %3757 = vmatmul.mubr.msk.f32.vlgmr.msra.gmra.mrb[14].mxu0 %vm303_vm3, %v2078_v37 }
0x1206   :  { %3760 = vmatpush3.msra.mxu0 %v3399_v54 }
0x1207   :  { %3764 = vmatprep.subr.mxu0 %v3398_v55 }
0x120a   :  { %3793 = vmatmul.mubr.msk.f32.vlgmr.msra.gmra.mrb[20].mxu1 %vm215_vm1, %v2618_v39 }
0x122c   :  { %v2425_v42 = vpop.xlane.xlu0 %2424 }
0x122d   :  { %v2429_v43 = vsub.f32 %v2421_v8, %v2425_v42  ;;  %v3435_v42 = vld [vmem:[%s4881_s7 + $0x1] ss:$0 sm:$0xff] }
0x122f   :  { %v2431_v47 = vmul.f32 1.442695, %v2429_v43 }
0x1234   :  { %v2428_v44 = vpop.xlane.xlu1 %2427 }
0x1235   :  { %v2430_v46 = vsub.f32 %v2422_v13, %v2428_v44 }
0x1237   :  { %v2433_v48 = vmul.f32 1.442695, %v2430_v46 }
0x1239   :  { %4172 = vpow2.f32 %v2433_v48 }
0x123a   :  { %4174 = vpow2.f32 %v2431_v47 }
0x1243   :  { %v4173_v50 = vpop.eup %4172 }
0x1244   :  { %v2438_v51 = vsel %vm303_vm3, %v4173_v50, 0.0  ;;  %v4175_v53 = vpop.eup %4174 }
0x1245   :  { %2439 = vadd.xlane.f32.xlu0 %v2438_v51  ;;  %v2435_v45 = vsel %vm303_vm3, %v4175_v53, 0.0 }
0x1249   :  { %2436 = vadd.xlane.f32.xlu0 %v2435_v45 }
0x125f   :  { %4099 = vrot.lane.b32.xlu0 %v4651_v10, %s4920_s0 }
0x12d2   :  { %v2440_v56 = vpop.xlane.xlu0 %2439 }
0x12d3   :  { %v3744_v40 = vpop.f32.mrb[12].mxu0 }
0x12d4   :  { %v1953_v57 = vpop.f32.mrb[13].mxu0 }
0x12d6   :  { %v2437_v38 = vpop.xlane.xlu0 %2436 }
0x12d7   :  { %4176 = vrcp.f32 %v2437_v38 }
0x12d8   :  { %4178 = vrcp.f32 %v2440_v56  ;;  %v3758_v58 = vpop.f32.mrb[14].mxu0 }
0x12d9   :  { %v2157_v59 = vpop.f32.mrb[15].mxu0 }
0x12da   :  { %v4100_v60 = vpop.permute.xlu0 %4099  ;;  %3761 = vmatprep.mubr.msk.f32.mxu0 %vm215_vm1, %v2157_v59 }
0x12db   :  { %v4102_v26 = vunpack.i.h.bf16 %v4100_v60  ;;  %v4101_v25 = vunpack.i.l.bf16 %v4100_v60  ;;  %3762 = vmatmul.mubr.msk.f32.vlgmr.msra.gmra.mrb[16].mxu0 %vm215_vm1, %v3758_v58  ;;  %v3441_v60 = vld [vmem:[%s4884_s10 + $0x28] sm:$0xff] }
0x12dc   :  { %3766 = vmatprep.mubr.msk.f32.mxu0 %vm215_vm1, %v1953_v57  ;;  %3765 = vmatpush3.msra.mxu0 %v3398_v55 }
0x12dd   :  { %v3954_v61 = vpack.c.bf16 %v4102_v26, %v4101_v25  ;;  %v3794_v62 = vpop.f32.mrb[20].mxu1  ;;  %v3442_v25 = vld [vmem:[%s4884_s10 + $0x30] sm:$0xff] }
0x12de   :  { %v2697_v63 = vpop.f32.mrb[21].mxu1  ;;  %v2707_v0 = vmul.f32 0.35355338, %v3794_v62 }
0x12df   :  { %v2706_v1 = vmul.f32 0.35355338, %v2697_v63  ;;  %3955 = vmatprep.subr.bf16.mxu0 %v3954_v61 }
0x12e0   :  { %v2709_v13 = vadd.f32 %v4203_v12, %v2707_v0  ;;  %v3439_v12 = vld [vmem:[%s4883_s9 + $0x1] ss:$0 sm:$0xff] }
0x12e1   :  { %v4177_v2 = vpop.eup %4176  ;;  %v2708_v41 = vadd.f32 %v4202_v4, %v2706_v1 }
0x12e2   :  { %v4179_v6 = vpop.eup %4178  ;;  %v2443_v8 = vmul.f32 %v4177_v2, %v4175_v53  ;;  %v2713_v15 = vsel %vm303_vm3, %v2709_v13, -inf }
0x12e3   :  { %v2710_v11 = vsel %vm303_vm3, %v2708_v41, -inf  ;;  %3767 = vmatmul.mubr.msk.f32.vlgmr.msra.gmra.mrb[16].mxu0 %vm215_vm1, %v3744_v40  ;;  %v2444_v14 = vmul.f32 %v4179_v6, %v4173_v50 }
0x12e4   :  { %2711 = vmax.xlane.f32.xlu1 %v2710_v11  ;;  %3957 = vmatpush3.bf16.msra.mxu0 %v3954_v61  ;;  %v3443_v61 = vld [vmem:[%s4884_s10 + $0x38] sm:$0xff] }
0x12e5   :  { %3780 = vmatprep.mubr.msk.f32.mxu0 %vm303_vm3, %v2443_v8  ;;  %3783 = vmatprep.subr.mxu0 %v3400_v9  ;;  %v3972_v62 = vpack.c.bf16 %v3443_v61, %v3442_v25  ;;  %v3438_v8 = vld [vmem:[%s4882_s8 + $0x1] ss:$0 sm:$0xff] }
0x12e7   :  { %3781 = vmatmul.mubr.msk.f32.vlgmr.msra.gmra.mrb[18].mxu0 %vm303_vm3, %v2444_v14 }
0x12e8   :  { %2714 = vmax.xlane.f32.xlu1 %v2713_v15  ;;  %3784 = vmatpush3.msra.mxu0 %v3400_v9 }
0x1371   :  { %v2712_v16 = vpop.xlane.xlu1 %2711 }
0x1372   :  { %v2716_v17 = vsub.f32 %v2708_v41, %v2712_v16 }
0x1374   :  { %v2718_v19 = vmul.f32 1.442695, %v2716_v17 }
0x1375   :  { %v2715_v7 = vpop.xlane.xlu1 %2714 }
0x1376   :  { %v2717_v18 = vsub.f32 %v2709_v13, %v2715_v7  ;;  %v3448_v7 = vld [vmem:[%s4886_s12 + $0x40] sm:$0xff] }
0x1378   :  { %v2720_v49 = vmul.f32 1.442695, %v2717_v18  ;;  %v3449_v18 = vld [vmem:[%s4886_s12 + $0x48] sm:$0xff] }
0x137a   :  { %4180 = vpow2.f32 %v2720_v49  ;;  %v3450_v49 = vld [vmem:[%s4886_s12 + $0x50] sm:$0xff] }
0x137b   :  { %4182 = vpow2.f32 %v2718_v19  ;;  %v3976_v19 = vpack.c.bf16 %v3449_v18, %v3448_v7 }
0x1384   :  { %v4181_v20 = vpop.eup %4180 }
0x1385   :  { %v2725_v21 = vsel %vm303_vm3, %v4181_v20, 0.0  ;;  %v4183_v52 = vpop.eup %4182 }
0x1386   :  { %2726 = vadd.xlane.f32.xlu1 %v2725_v21  ;;  %v2722_v22 = vsel %vm303_vm3, %v4183_v52, 0.0  ;;  %v3452_v21 = vld [vmem:[%s4886_s12 + $0x60] sm:$0xff] }
0x138a   :  { %2723 = vadd.xlane.f32.xlu1 %v2722_v22  ;;  %v3453_v22 = vld [vmem:[%s4886_s12 + $0x68] sm:$0xff] }
0x139b   :  { %4104 = vrot.lane.b32.xlu1 %v4651_v10, %s4921_s27 }
0x13ba   :  { %v3782_v23 = vpop.f32.mrb[18].mxu0 }
0x13bb   :  { %v2523_v24 = vpop.f32.mrb[19].mxu0 }
0x13bc   :  { %3785 = vmatprep.mubr.msk.f32.mxu0 %vm215_vm1, %v2523_v24  ;;  %v3454_v24 = vld [vmem:[%s4886_s12 + $0x70] sm:$0xff] }
0x13bd   :  { %3786 = vmatmul.mubr.msk.f32.vlgmr.msra.gmra.mrb[16].mxu0 %vm215_vm1, %v3782_v23  ;;  %v3984_v23 = vpack.c.bf16 %v3453_v22, %v3452_v21  ;;  %v3462_v21 = vld [vmem:[%s4888_s14 + $0x1] ss:$0 sm:$0xff]  ;;  %s4266_s14 = smov [#allocation2]  }
0x13be   :  { %v3463_v22 = vld [vmem:[%s4889_s15 + $0x1] ss:$0 sm:$0xff]  ;;  %s3317_s5 = sshll.u32 %s4266_s14, 4  ;;  %s3318_s5 = int_to_ptr.vmem [resolvable:$true] %s3317_s5 }
0x13bf   :  { %s4204_s2 = scalar_lea.vmem %s3318_s5, 256  ;;  %p4209_p1 = scmp.lt.s32.totalorder %s3318_s5, %s3318_s5 }
0x13c0   :  { %p4205_p0 = scmp.ne.s32.totalorder %s3318_s5, %s4204_s2  ;;  %p4210_p2 = scmp.lt.s32.totalorder %s4204_s2, %s4204_s2 }
0x13c2   :  { %p4211_p3 = por %p4210_p2, %p4209_p1 }
0x13c4   :  { %p4212_p4 = pnand %p4211_p3, %p4205_p0 }
0x1413   :  { %v2727_v27 = vpop.xlane.xlu1 %2726 }
0x1414   :  { %4184 = vrcp.f32 %v2727_v27  ;;  %v3455_v27 = vld [vmem:[%s4886_s12 + $0x78] sm:$0xff] }
0x1417   :  { %v2724_v28 = vpop.xlane.xlu1 %2723 }
0x1418   :  { %4186 = vrcp.f32 %v2724_v28  ;;  %v3988_v28 = vpack.c.bf16 %v3455_v27, %v3454_v24 }
0x141b   :  { %v4105_v29 = vpop.permute.xlu1 %4104 }
0x141c   :  { %v4107_v35 = vunpack.i.h.bf16 %v4105_v29  ;;  %v4106_v33 = vunpack.i.l.bf16 %v4105_v29  ;;  %v3445_v29 = vld [vmem:[%s4885_s11 + $0x1] ss:$0 sm:$0xff] }
0x141e   :  { %v3964_v30 = vpack.c.bf16 %v4107_v35, %v4106_v33  ;;  %v4185_v10 = vpop.eup %4184 }
0x141f   :  { %v2731_v36 = vmul.f32 %v4185_v10, %v4181_v20  ;;  %v3451_v20 = vld [vmem:[%s4886_s12 + $0x58] sm:$0xff] }
0x1420   :  { %3965 = vmatprep.subr.bf16.mxu0 %v3964_v30 }
0x1421   :  { %3967 = vmatpush3.bf16.msra.mxu0 %v3964_v30 }
0x1422   :  { %v4187_v32 = vpop.eup %4186  ;;  %3802 = vmatprep.subr.mxu0 %v3401_v31 }
0x1423   :  { %v2730_v34 = vmul.f32 %v4187_v32, %v4183_v52  ;;  %v3980_v52 = vpack.c.bf16 %v3451_v20, %v3450_v49 }
0x1425   :  { %3799 = vmatprep.mubr.msk.f32.mxu0 %vm303_vm3, %v2730_v34 }
0x1426   :  { %3800 = vmatmul.mubr.msk.f32.vlgmr.msra.gmra.mrb[20].mxu0 %vm303_vm3, %v2731_v36 }
0x1427   :  { %3803 = vmatpush3.msra.mxu0 %v3401_v31 }
0x1428   :  { %3977 = vmatprep.subr.bf16.mxu0 %v3976_v19 }
0x14f9   :  { %v3801_v37 = vpop.f32.mrb[20].mxu0 }
0x14fa   :  { %v2810_v39 = vpop.f32.mrb[21].mxu0 }
0x14fb   :  { %3804 = vmatprep.mubr.msk.f32.mxu0 %vm215_vm1, %v2810_v39 }
0x14fc   :  { %3805 = vmatmul.mubr.msk.f32.vlgmr.msra.gmra.mrb[16].mxu0 %vm215_vm1, %v3801_v37 }
0x14fd   :  { %3979 = vmatpush3.bf16.msra.mxu0 %v3976_v19 }
0x14fe   :  { %3981 = vmatprep.subr.bf16.mxu0 %v3980_v52 }
0x1501   :  { %3983 = vmatpush3.bf16.msra.mxu0 %v3980_v52 }
0x1502   :  { %3985 = vmatprep.subr.bf16.mxu0 %v3984_v23 }
0x1505   :  { %3987 = vmatpush3.bf16.msra.mxu0 %v3984_v23 }
0x1506   :  { %3989 = vmatprep.subr.bf16.mxu0 %v3988_v28 }
0x1509   :  { %3991 = vmatpush3.bf16.msra.mxu0 %v3988_v28 }
0x15cf   :  { %v3806_v43 = vpop.f32.mrb[16].mxu0 }
0x15d0   :  { %v2911_v44 = vadd.f32 %v3806_v43, %v3435_v42  ;;  %v2891_v46 = vpop.f32.mrb[17].mxu0 }
0x15d1   :  { %v2910_v47 = vadd.f32 %v3435_v42, %v2891_v46 }
0x15d2   :  { %v2913_v48 = vadd.f32 %v2911_v44, %v4636_v5 }
0x15d3   :  { %v2912_v50 = vadd.f32 %v2910_v47, %v4632_v3  ;;  %v3440_v3 = vld [vmem:[%s4884_s10 + $0x20] sm:$0xff] }
0x15d4   :  { %v2921_v51 = vsel %vm67_vm0, %v2913_v48, 0.0  ;;  %v3968_v26 = vpack.c.bf16 %v3441_v60, %v3440_v3 }
0x15d5   :  { %2922 = vadd.xlane.f32.xlu1 %v2921_v51  ;;  %v2918_v53 = vsel %vm67_vm0, %v2912_v50, 0.0 }
0x15d6   :  { %2919 = vadd.xlane.f32.xlu0 %v2918_v53  ;;  %3969 = vmatprep.subr.bf16.mxu1 %v3968_v26 }
0x15d7   :  { %3971 = vmatpush3.bf16.msra.mxu1 %v3968_v26 }
0x15d8   :  { %3973 = vmatprep.subr.bf16.mxu1 %v3972_v62 }
0x15db   :  { %3975 = vmatpush3.bf16.msra.mxu1 %v3972_v62 }
0x1662   :  { %v2923_v45 = vpop.xlane.xlu1 %2922 }
0x1663   :  { %v2925_v54 = vmul.f32 0.03125, %v2923_v45  ;;  %v2920_v55 = vpop.xlane.xlu0 %2919 }
0x1664   :  { %v2924_v56 = vmul.f32 0.03125, %v2920_v55 }
0x1665   :  { %v2927_v40 = vsub.f32 %v2913_v48, %v2925_v54 }
0x1666   :  { %v2926_v57 = vsub.f32 %v2912_v50, %v2924_v56  ;;  %v3457_v56 = vld [vmem:[%s4887_s13 + $0x1] ss:$0 sm:$0xff] }
0x1667   :  { %v2929_v59 = vmul.f32 %v2927_v40, %v2927_v40 }
0x1668   :  { %v2928_v38 = vmul.f32 %v2926_v57, %v2926_v57 }
0x1669   :  { %v2933_v5 = vsel %vm67_vm0, %v2929_v59, 0.0 }
0x166a   :  { %v2930_v58 = vsel %vm67_vm0, %v2928_v38, 0.0 }
0x166b   :  { %2931 = vadd.xlane.f32.xlu0 %v2930_v58 }
0x166f   :  { %2934 = vadd.xlane.f32.xlu0 %v2933_v5 }
0x16f8   :  { %v2932_v63 = vpop.xlane.xlu0 %2931 }
0x16f9   :  { %v2936_v0 = vmul.f32 0.03125, %v2932_v63 }
0x16fb   :  { %v2938_v1 = vadd.f32 1e-12, %v2936_v0 }
0x16fc   :  { %v2935_v2 = vpop.xlane.xlu0 %2934 }
0x16fd   :  { %4188 = vrsqrt.f32 %v2938_v1  ;;  %v2937_v4 = vmul.f32 0.03125, %v2935_v2 }
0x16ff   :  { %v2939_v41 = vadd.f32 1e-12, %v2937_v4 }
0x1701   :  { %4190 = vrsqrt.f32 %v2939_v41 }
0x1707   :  { %v4189_v6 = vpop.eup %4188 }
0x1708   :  { %v2942_v11 = vmul.f32 %v4189_v6, %v2926_v57  ;;  %v3225_v6 = vld [vmem:[%s4890_s16] sm:$0xff] }
0x170a   :  { %v2950_v13 = vmul.f32 %v3438_v8, %v2942_v11 }
0x170b   :  { %v4191_v14 = vpop.eup %4190 }
0x170c   :  { %v2943_v15 = vmul.f32 %v4191_v14, %v2927_v40  ;;  %v2958_v9 = vadd.f32 %v3439_v12, %v2950_v13  ;;  %v3227_v13 = vld [vmem:[%s4890_s16 + $0x10] sm:$0xff]  ;;  %v3228_v14 = vld [vmem:[%s4890_s16 + $0x18] sm:$0xff] }
0x170e   :  { %v2951_v16 = vmul.f32 %v3438_v8, %v2943_v15  ;;  %3815 = vmatprep.mubr.msk.f32.mxu1 %vm67_vm0, %v2958_v9  ;;  %v3226_v8 = vld [vmem:[%s4890_s16 + $0x8] sm:$0xff]  ;;  %v3996_v15 = vpack.c.bf16 %v3228_v14, %v3227_v13 }
0x170f   :  { %v3993_v11 = vpack.c.bf16 %v3226_v8, %v3225_v6 }
0x1710   :  { %v2959_v17 = vadd.f32 %v3439_v12, %v2951_v16  ;;  %v4263_v12 = vmov 0.0|0.0  }
0x1711   :  { %3992 = vmatprep.subr.bf16.mxu1 %v4263_v12 }
0x1712   :  { %3816 = vmatmul.mubr.msk.f32.vlgmr.msra.gmra.mrb[22].mxu1 %vm67_vm0, %v2959_v17 }
0x1713   :  { %3994 = vmatpush3.bf16.msra.mxu1 %v3993_v11 }
0x1714   :  { %3995 = vmatprep.subr.bf16.mxu1 %v4263_v12 }
0x1717   :  { %3997 = vmatpush3.bf16.msra.mxu1 %v3996_v15 }
0x17e5   :  { %v3817_v35 = vpop.f32.mrb[22].mxu1 }
0x17e6   :  { %v3051_v33 = vadd.f32 %v3817_v35, %v3445_v29  ;;  %v3045_v30 = vpop.f32.mrb[23].mxu1 }
0x17e7   :  { %v3046_v31 = vadd.f32 %v3445_v29, %v3045_v30 }
0x17e8   :  { %v3057_v10 = vmul.f32 0.044715, %v3051_v33  ;;  %v3055_v45 = vmul.f32 0.5, %v3051_v33 }
0x17e9   :  { %v3056_v32 = vmul.f32 0.044715, %v3046_v31  ;;  %v3054_v51 = vmul.f32 0.5, %v3046_v31 }
0x17ea   :  { %v3059_v34 = vmul.f32 %v3057_v10, %v3051_v33 }
0x17eb   :  { %v3058_v36 = vmul.f32 %v3056_v32, %v3046_v31 }
0x17ec   :  { %v3061_v37 = vmul.f32 %v3059_v34, %v3051_v33 }
0x17ed   :  { %v3060_v39 = vmul.f32 %v3058_v36, %v3046_v31 }
0x17ee   :  { %v3063_v42 = vadd.f32 %v3061_v37, %v3051_v33 }
0x17ef   :  { %v3062_v43 = vadd.f32 %v3060_v39, %v3046_v31 }
0x17f0   :  { %v3065_v44 = vmul.f32 0.7978846, %v3063_v42 }
0x17f1   :  { %v3064_v46 = vmul.f32 0.7978846, %v3062_v43 }
0x17f2   :  { %4192 = vtanh.f32 %v3065_v44 }
0x17f3   :  { %4194 = vtanh.f32 %v3064_v46 }
0x17fc   :  { %v4193_v47 = vpop.eup %4192 }
0x17fd   :  { %v4195_v48 = vpop.eup %4194  ;;  %v3069_v50 = vadd.f32 1.0, %v4193_v47 }
0x17fe   :  { %v3068_v53 = vadd.f32 1.0, %v4195_v48 }
0x17ff   :  { %v3071_v55 = vmul.f32 %v3069_v50, %v3055_v45 }
0x1800   :  { %v3070_v54 = vmul.f32 %v3068_v53, %v3054_v51 }
0x1802   :  { %3834 = vmatprep.mubr.msk.f32.mxu0 %vm1533_vm4, %v3070_v54 }
0x1803   :  { %3835 = vmatmul.mubr.msk.f32.vlgmr.msra.gmra.mrb[22].mxu0 %vm1533_vm4, %v3071_v55 }
0x18d6   :  { %v3836_v40 = vpop.f32.mrb[22].mxu0 }
0x18d7   :  { %v3167_v57 = vadd.f32 %v3836_v40, %v3457_v56  ;;  %v3161_v38 = vpop.f32.mrb[23].mxu0 }
0x18d8   :  { %v3162_v58 = vadd.f32 %v3457_v56, %v3161_v38 }
0x18d9   :  { %v3171_v59 = vadd.f32 %v3167_v57, %v2959_v17 }
0x18da   :  { %v3170_v3 = vadd.f32 %v3162_v58, %v2958_v9  ;;  %v4265_v9 = vmov 0.0  }
0x18db   :  { %v3179_v5 = vsel %vm67_vm0, %v3171_v59, 0.0  ;;  %3845 = vmatprep.mubr.msk.f32.mxu1 %vm4264_vm5, %v4265_v9 }
0x18dc   :  { %3180 = vadd.xlane.f32.xlu0 %v3179_v5  ;;  %v3176_v60 = vsel %vm67_vm0, %v3170_v3, 0.0 }
0x18e0   :  { %3177 = vadd.xlane.f32.xlu0 %v3176_v60 }
0x1969   :  { %v3181_v26 = vpop.xlane.xlu0 %3180 }
0x196a   :  { %v3183_v25 = vmul.f32 0.03125, %v3181_v26 }
0x196c   :  { %v3185_v61 = vsub.f32 %v3171_v59, %v3183_v25 }
0x196d   :  { %v3178_v62 = vpop.xlane.xlu0 %3177 }
0x196e   :  { %v3182_v63 = vmul.f32 0.03125, %v3178_v62  ;;  %v3187_v0 = vmul.f32 %v3185_v61, %v3185_v61 }
0x1970   :  { %v3184_v1 = vsub.f32 %v3170_v3, %v3182_v63  ;;  %v3191_v2 = vsel %vm67_vm0, %v3187_v0, 0.0 }
0x1971   :  { %3192 = vadd.xlane.f32.xlu0 %v3191_v2 }
0x1972   :  { %v3186_v4 = vmul.f32 %v3184_v1, %v3184_v1 }
0x1974   :  { %v3188_v41 = vsel %vm67_vm0, %v3186_v4, 0.0 }
0x1975   :  { %3189 = vadd.xlane.f32.xlu1 %v3188_v41 }
0x19fe   :  { %v3193_v16 = vpop.xlane.xlu0 %3192 }
0x19ff   :  { %v3195_v17 = vmul.f32 0.03125, %v3193_v16 }
0x1a01   :  { %v3197_v7 = vadd.f32 1e-12, %v3195_v17 }
0x1a02   :  { %v3190_v18 = vpop.xlane.xlu1 %3189 }
0x1a03   :  { %4196 = vrsqrt.f32 %v3197_v7  ;;  %v3194_v19 = vmul.f32 0.03125, %v3190_v18 }
0x1a05   :  { %v3196_v49 = vadd.f32 1e-12, %v3194_v19 }
0x1a07   :  { %4198 = vrsqrt.f32 %v3196_v49 }
0x1a0d   :  { %v4197_v20 = vpop.eup %4196 }
0x1a0e   :  { %v3201_v52 = vmul.f32 %v4197_v20, %v3185_v61 }
0x1a10   :  { %v3209_v23 = vmul.f32 %v3462_v21, %v3201_v52 }
0x1a11   :  { %v4199_v24 = vpop.eup %4198 }
0x1a12   :  { %v3200_v27 = vmul.f32 %v4199_v24, %v3184_v1  ;;  %v3217_v28 = vadd.f32 %v3463_v22, %v3209_v23 }
0x1a14   :  { %v3208_v29 = vmul.f32 %v3462_v21, %v3200_v27  ;;  %3219 = vst.msk [vmem:[#allocation2 + $0x8] sm:$0xff] %vm67_vm0, %v3217_v28  ;;  %v3221_v33 = vrot.slane %v3217_v28, 7 }
0x1a16   :  { %v3216_v35 = vadd.f32 %v3463_v22, %v3208_v29 }
0x1a18   :  { %v3224_v30 = vsel %vm3223_vm6, %v3216_v35, %v3221_v33  ;;  %3218 = vst.msk [vmem:[#allocation2] sm:$0xff] %vm67_vm0, %v3216_v35 }
0x1a19   :  { %3846 = vmatmul.mubr.msk.f32.vlgmr.msra.gmra.mrb[24].mxu1 %vm67_vm0, %v3224_v30 }
0x1a1a   :  { %4215 = shalt.err (!%p4212_p4)
}
0x1a1b   :  { %s4216_s6 = scalar_lea.hbm %s4892_s18, 256 }
0x1a1c   :  { %p4217_p5 = scmp.ne.s32.totalorder %s4892_s18, %s4216_s6  ;;  %p4220_p6 = scmp.lt.u32.totalorder %s4216_s6, %s4892_s18 }
0x1a1e   :  { %p4222_p7 = pnand %p4220_p6, %p4217_p5 }
0x1a20   :  { %4225 = shalt.err (!%p4222_p7)
}
0x1a21   :  { %s4267_s3 = smov 128   ;;  %s4268_s29 = smov 8   ;;  %v3464_v31 = vld [vmem:[%s4891_s17] ss:$0 sm:$0xff]  ;;  %vm3310_vm7 = vcmask 254976  }
0x1a22   :  { %3323 = dma.vmem_to_hbm [thread:$0]  %s3318_s5, 256, %s4892_s18, [#allocation3], %s4267_s3, %s4267_s3, %s4268_s29  }
0x1a23   :  { %s4269_s13 = smov [#allocation4]  }
0x1a24   :  { %s3330_s1 = sshll.u32 %s4269_s13, 4  ;;  %s3331_s1 = int_to_ptr.vmem [resolvable:$true] %s3330_s1 }
0x1a25   :  { %s4226_s20 = scalar_lea.vmem %s3331_s1, 32  ;;  %p4231_p9 = scmp.lt.s32.totalorder %s3331_s1, %s3331_s1 }
0x1a26   :  { %p4227_p8 = scmp.ne.s32.totalorder %s3331_s1, %s4226_s20  ;;  %p4232_p10 = scmp.lt.s32.totalorder %s4226_s20, %s4226_s20 }
0x1a28   :  { %p4233_p11 = por %p4232_p10, %p4231_p9 }
0x1a2a   :  { %p4234_p12 = pnand %p4233_p11, %p4227_p8 }
0x1aec   :  { %v3305_v10 = vpop.f32.mrb[24].mxu1 }
0x1aed   :  { %v3306_v32 = vadd.f32 %v3464_v31, %v3305_v10  ;;  %v3847_v34 = vpop.f32.mrb[25].mxu1 }
0x1aef   :  { %4200 = vtanh.f32 %v3306_v32 }
0x1af9   :  { %v4201_v36 = vpop.eup %4200 }
0x1afa   :  { %3311 = vst.msk [vmem:[#allocation4] sm:$0x3] %vm3310_vm7, %v4201_v36 }
0x1afb   :  { %4237 = shalt.err (!%p4234_p12)
}
0x1afc   :  { %s4238_s17 = scalar_lea.hbm %s4893_s19, 32 }
0x1afd   :  { %p4239_p13 = scmp.ne.s32.totalorder %s4893_s19, %s4238_s17  ;;  %p4242_p0 = scmp.lt.u32.totalorder %s4238_s17, %s4893_s19 }
0x1aff   :  { %p4244_p1 = pnand %p4242_p0, %p4239_p13 }
0x1b01   :  { %4247 = shalt.err (!%p4244_p1)
}
0x1b02   :  { %3333 = dma.vmem_to_hbm [thread:$0]  %s3331_s1, 32, %s4893_s19, [#allocation5]  }
0x1b03   :  { %4248 = dma.done.wait [#allocation3], 256  }
0x1b04   :  { %4249 = vsyncadd [#allocation3], 4294967040 }
0x1b05   :  { %4250 = dma.done.wait [#allocation5], 32  }
0x1b06   :  { %4251 = vsyncadd [#allocation5], 4294967264 }
0x1b07   :  { %3340 = vsyncpa [#allocation3], 1 }
0x1b08   :  { %3341 = vsyncpa [#allocation5], 1 }

</bundles_post_ra>
